<compile_context>
chip_gen: v7x
topology: tpu7x:2x2x1
jax: 0.10.0
libtpu: 0.0.40
codegen_flags: <defaults>
</compile_context>

<pallas_src>
import jax
import jax.numpy as jnp
import numpy as np
from jax.experimental import pallas as pl
from jax.experimental.pallas import tpu as pltpu

# ---------------- model config (small, consistent with the module) ----------------
SEQ_LEN = 16          # configs.seq_len (backcast length)
PRED_LEN = 8          # configs.pred_len
ENC_IN = 4            # configs.enc_in (c_in)
D_MODEL = 32          # configs.d_model
DILATIONS = (1, 2)    # configs.dilations
N_MARK = 4            # time features per step
BN_EPS = 1e-5
BATCH = 2

# ---------------- packed-parameter slab layout (rows, all 8-aligned starts) ----------------
_NL = len(DILATIONS)
OFF_EMB = 0                                   # (ENC_IN + N_MARK, D) fused enc embedding weight
OFF_DTW = 8                                   # (N_MARK, D) decoder temporal weight
_TCN_BASE = 16
OFF_C1 = tuple(_TCN_BASE + l * 4 * D_MODEL for l in range(_NL))              # (2D, D) each
OFF_C2 = tuple(_TCN_BASE + l * 4 * D_MODEL + 2 * D_MODEL for l in range(_NL))
OFF_F1 = _TCN_BASE + _NL * 4 * D_MODEL        # (D, D)
OFF_F2 = OFF_F1 + D_MODEL                     # (D, D)
OFF_DWE = OFF_F2 + D_MODEL                    # (D, D) dense enc half; live cols 0:C, rest zero
OFF_DWD = OFF_DWE + D_MODEL                   # (D, D) dense dec half; live cols 0:C, rest zero
MAT_ROWS = OFF_DWD + D_MODEL                  # = 400 for the default config

VEC_EMB_B = 0                                 # combined encoder embedding bias
# rows 1 + 4*l .. 4 + 4*l : (bn1g, bn1b, bn2g, bn2b) for TCN layer l
VEC_FBN1G = 1 + 4 * _NL
VEC_FBN1B = VEC_FBN1G + 1
VEC_FBN2G = VEC_FBN1G + 2
VEC_FBN2B = VEC_FBN1G + 3
VEC_DB = VEC_FBN1G + 4                        # dense bias; live cols 0:C, rest zero
VEC_ROWS = ((VEC_DB + 1 + 7) // 8) * 8        # pad rows to a multiple of 8


# ------------------------------- Pallas kernel -------------------------------
def deeptcn_kernel(xcat_ref, xmdec_ref, mat_ref, vec_ref, out_ref):
    B, L, _ = xcat_ref.shape
    D = D_MODEL
    C = ENC_IN
    M = N_MARK
    CM = ENC_IN + N_MARK

    def bmm(a, w):
        # a: (B, T, K) activations, w: (K, N) shared weight -> (B, T, N).
        # B is tiny & static: rank-2 MXU dots per batch element, restacked.
        nb = a.shape[0]
        return jnp.stack(
            [jnp.dot(a[b], w, preferred_element_type=jnp.float32) for b in range(nb)],
            axis=0)

    def bn(y, g, b):
        # BatchNorm1d (training mode): per-channel stats over (batch, time),
        # single-pass sums, folded into one scale/shift FMA on the tile.
        # y: (B, T, D); g, b: (1, D).
        n = y.shape[0] * y.shape[1]
        s1 = jnp.sum(y, axis=(0, 1), keepdims=True)
        s2 = jnp.sum(y * y, axis=(0, 1), keepdims=True)
        mean = s1 * (1.0 / n)
        var = s2 * (1.0 / n) - mean * mean
        scale = jax.lax.rsqrt(var + BN_EPS) * g          # (1, 1, D)
        shift = b - mean * scale                         # (1, 1, D)
        return y * scale + shift

    def relu(v):
        return jnp.maximum(v, 0.0)

    # ---- encoder embedding: value + temporal Linear fused into one matmul ----
    x = bmm(xcat_ref[...], mat_ref[OFF_EMB:OFF_EMB + CM, :]) \
        + vec_ref[VEC_EMB_B:VEC_EMB_B + 1, :]

    # ---- stack of ResidualTCN blocks (dilated causal Conv1d, k=2, no padding) ----
    # Conv biases are dropped: a per-channel constant cancels exactly under
    # training-mode BatchNorm.
    tlen = L
    for l, d in enumerate(DILATIONS):
        t1 = tlen - d
        t2 = t1 - d
        vb = 1 + 4 * l
        # conv1: out[t] = x[t] @ W0 + x[t+d] @ W1  ->  [x[:t1] || x[d:]] @ [W0; W1]
        xc = jnp.concatenate([x[:, :t1, :], x[:, d:d + t1, :]], axis=-1)     # (B, t1, 2D)
        h = bmm(xc, mat_ref[OFF_C1[l]:OFF_C1[l] + 2 * D, :])
        h = relu(bn(h, vec_ref[vb:vb + 1, :], vec_ref[vb + 1:vb + 2, :]))
        # conv2
        hc = jnp.concatenate([h[:, :t2, :], h[:, d:d + t2, :]], axis=-1)     # (B, t2, 2D)
        h2 = bmm(hc, mat_ref[OFF_C2[l]:OFF_C2[l] + 2 * D, :])
        h2 = bn(h2, vec_ref[vb + 2:vb + 3, :], vec_ref[vb + 3:vb + 4, :])
        # residual on the last t2 time-steps of the block input
        x = relu(h2 + x[:, tlen - t2:, :])
        tlen = t2

    # ---- temporal mean of the encoder output ----
    enc_mean = jnp.mean(x, axis=1, keepdims=True)                            # (B, 1, D)

    # ---- decoder embedding (value input is zeros; all pre-BN biases cancel) ----
    dec = bmm(xmdec_ref[...], mat_ref[OFF_DTW:OFF_DTW + M, :])               # (B, P, D)

    # ---- futureResidual decoder ----
    h = bmm(dec, mat_ref[OFF_F1:OFF_F1 + D, :])
    h = relu(bn(h, vec_ref[VEC_FBN1G:VEC_FBN1G + 1, :],
                vec_ref[VEC_FBN1B:VEC_FBN1B + 1, :]))
    h = bmm(h, mat_ref[OFF_F2:OFF_F2 + D, :])
    h = bn(h, vec_ref[VEC_FBN2G:VEC_FBN2G + 1, :],
           vec_ref[VEC_FBN2B:VEC_FBN2B + 1, :])

    # ---- dense head: relu(concat(enc, dec)) @ W  ==  relu(enc)@W_top + relu(dec)@W_bot ----
    # Full lane-width (D) dots against zero-padded weight slabs; slice to C only at store.
    out = (bmm(relu(enc_mean), mat_ref[OFF_DWE:OFF_DWE + D, :])              # (B, 1, D)
           + bmm(relu(h), mat_ref[OFF_DWD:OFF_DWD + D, :])                   # (B, P, D)
           + vec_ref[VEC_DB:VEC_DB + 1, :])
    out_ref[...] = out[..., :C].astype(out_ref.dtype)


# ------------------------------- wrapper / glue -------------------------------
@jax.jit
def deeptcn_forward(x_enc, x_mark_enc, x_dec, x_mark_dec, mat, vec):
    del x_dec  # unused: the PyTorch model builds a fresh zeros decoder input
    x_cat = jnp.concatenate([x_enc, x_mark_enc], axis=-1)   # fuse value+temporal embedding input
    B = x_enc.shape[0]
    return pl.pallas_call(
        deeptcn_kernel,
        out_shape=jax.ShapeDtypeStruct((B, PRED_LEN, ENC_IN), jnp.float32),
        in_specs=[pl.BlockSpec(memory_space=pltpu.MemorySpace.VMEM)] * 4,
        out_specs=pl.BlockSpec(memory_space=pltpu.MemorySpace.VMEM),
    )(x_cat, x_mark_dec, mat, vec)


def init_params(key):
    nL = len(DILATIONS)
    ks = iter(jax.random.split(key, 32))

    def u(shape, scale=0.1):
        return jax.random.uniform(next(ks), shape, jnp.float32, -scale, scale)

    D, C, M = D_MODEL, ENC_IN, N_MARK
    return dict(
        # encoder embedding (value + temporal), weights stored (in, out)
        ev_w=u((C, D)), ev_b=u((1, D)), et_w=u((M, D)), et_b=u((1, D)),
        # decoder embedding (value bias only — decoder value input is zeros) + temporal
        dv_b=u((1, D)), dt_w=u((M, D)), dt_b=u((1, D)),
        # TCN layers: conv weight taps (k=0, k=1) stored transposed as (in, out)
        c1w0=u((nL, D, D)), c1w1=u((nL, D, D)), c1b=u((nL, D)),
        bn1g=1.0 + u((nL, D)), bn1b=u((nL, D)),
        c2w0=u((nL, D, D)), c2w1=u((nL, D, D)), c2b=u((nL, D)),
        bn2g=1.0 + u((nL, D)), bn2b=u((nL, D)),
        # futureResidual
        f1w=u((D, D)), f1b=u((1, D)), fbn1g=1.0 + u((1, D)), fbn1b=u((1, D)),
        f2w=u((D, D)), f2b=u((1, D)), fbn2g=1.0 + u((1, D)), fbn2b=u((1, D)),
        # dense: Linear(2*d_model -> c_in), stored (in, out)
        dw=u((2 * D, C)), db=u((1, C)),
    )


def pack_params(p):
    """One-time packing of all parameters into two slabs (done outside the kernel).

    Biases that cancel exactly under training-mode BatchNorm (c1b, c2b, f1b, f2b,
    dt_b, dv_b) are intentionally dropped.
    """
    D, C, M = D_MODEL, ENC_IN, N_MARK
    nL = len(DILATIONS)

    mat = jnp.zeros((MAT_ROWS, D), jnp.float32)
    mat = mat.at[OFF_EMB:OFF_EMB + C + M].set(
        jnp.concatenate([p["ev_w"], p["et_w"]], axis=0))
    mat = mat.at[OFF_DTW:OFF_DTW + M].set(p["dt_w"])
    for l in range(nL):
        mat = mat.at[OFF_C1[l]:OFF_C1[l] + 2 * D].set(
            jnp.concatenate([p["c1w0"][l], p["c1w1"][l]], axis=0))
        mat = mat.at[OFF_C2[l]:OFF_C2[l] + 2 * D].set(
            jnp.concatenate([p["c2w0"][l], p["c2w1"][l]], axis=0))
    mat = mat.at[OFF_F1:OFF_F1 + D].set(p["f1w"])
    mat = mat.at[OFF_F2:OFF_F2 + D].set(p["f2w"])
    mat = mat.at[OFF_DWE:OFF_DWE + D, 0:C].set(p["dw"][:D])
    mat = mat.at[OFF_DWD:OFF_DWD + D, 0:C].set(p["dw"][D:])

    vec = jnp.zeros((VEC_ROWS, D), jnp.float32)
    vec = vec.at[VEC_EMB_B].set((p["ev_b"] + p["et_b"])[0])
    for l in range(nL):
        vb = 1 + 4 * l
        vec = vec.at[vb + 0].set(p["bn1g"][l])
        vec = vec.at[vb + 1].set(p["bn1b"][l])
        vec = vec.at[vb + 2].set(p["bn2g"][l])
        vec = vec.at[vb + 3].set(p["bn2b"][l])
    vec = vec.at[VEC_FBN1G].set(p["fbn1g"][0])
    vec = vec.at[VEC_FBN1B].set(p["fbn1b"][0])
    vec = vec.at[VEC_FBN2G].set(p["fbn2g"][0])
    vec = vec.at[VEC_FBN2B].set(p["fbn2b"][0])
    vec = vec.at[VEC_DB, 0:C].set(p["db"][0])
    return mat, vec


# ------------------------- pure-JAX reference (for checking) -------------------------
# Matches the PyTorch module (all biases included); the kernel's bias drops are
# exact algebraic cancellations under batch-statistic BN.
def reference_forward(x_enc, x_mark_enc, x_mark_dec, p):
    def bn(y, g, b):
        mean = jnp.mean(y, axis=(0, 1), keepdims=True)
        var = jnp.mean((y - mean) ** 2, axis=(0, 1), keepdims=True)
        return (y - mean) * jax.lax.rsqrt(var + BN_EPS) * g.reshape(1, 1, -1) + b.reshape(1, 1, -1)

    relu = jax.nn.relu
    x = jnp.einsum("blc,cd->bld", x_enc, p["ev_w"]) + p["ev_b"].reshape(1, 1, -1)
    x = x + jnp.einsum("blc,cd->bld", x_mark_enc, p["et_w"]) + p["et_b"].reshape(1, 1, -1)
    tlen = x.shape[1]
    for l, d in enumerate(DILATIONS):
        t1, t2 = tlen - d, tlen - 2 * d
        h = (jnp.einsum("btd,de->bte", x[:, :t1], p["c1w0"][l])
             + jnp.einsum("btd,de->bte", x[:, d:], p["c1w1"][l])
             + p["c1b"][l].reshape(1, 1, -1))
        h = relu(bn(h, p["bn1g"][l], p["bn1b"][l]))
        h2 = (jnp.einsum("btd,de->bte", h[:, :t2], p["c2w0"][l])
              + jnp.einsum("btd,de->bte", h[:, d:], p["c2w1"][l])
              + p["c2b"][l].reshape(1, 1, -1))
        h2 = bn(h2, p["bn2g"][l], p["bn2b"][l])
        x = relu(h2 + x[:, tlen - t2:])
        tlen = t2
    enc_mean = jnp.mean(x, axis=1)
    B, P = x.shape[0], x_mark_dec.shape[1]
    enc_out = jnp.broadcast_to(enc_mean[:, None, :], (B, P, enc_mean.shape[-1]))
    dec = (jnp.einsum("bpc,cd->bpd", x_mark_dec, p["dt_w"]) + p["dt_b"].reshape(1, 1, -1)
           + p["dv_b"].reshape(1, 1, -1))
    h = jnp.einsum("bpd,de->bpe", dec, p["f1w"]) + p["f1b"].reshape(1, 1, -1)
    h = relu(bn(h, p["fbn1g"], p["fbn1b"]))
    h = jnp.einsum("bpd,de->bpe", h, p["f2w"]) + p["f2b"].reshape(1, 1, -1)
    h = bn(h, p["fbn2g"], p["fbn2b"])
    cat = relu(jnp.concatenate([enc_out, h], axis=-1))
    return jnp.einsum("bpd,dc->bpc", cat, p["dw"]) + p["db"].reshape(1, 1, -1)


if __name__ == "__main__":
    key = jax.random.PRNGKey(0)
    kx, km, kd, kp = jax.random.split(key, 4)
    x_enc = jax.random.normal(kx, (BATCH, SEQ_LEN, ENC_IN), jnp.float32)
    x_mark_enc = jax.random.normal(km, (BATCH, SEQ_LEN, N_MARK), jnp.float32)
    x_dec = jnp.zeros((BATCH, PRED_LEN, ENC_IN), jnp.float32)  # placeholder, unused
    x_mark_dec = jax.random.normal(kd, (BATCH, PRED_LEN, N_MARK), jnp.float32)
    params = init_params(kp)
    mat, vec = pack_params(params)  # one-time packing; not part of the per-call path

    out = deeptcn_forward(x_enc, x_mark_enc, x_dec, x_mark_dec, mat, vec)
    out = jax.block_until_ready(out)

    ref = reference_forward(x_enc, x_mark_enc, x_mark_dec, params)
    np.testing.assert_allclose(np.asarray(out), np.asarray(ref), rtol=2e-3, atol=2e-3)
    assert out.shape == (BATCH, PRED_LEN, ENC_IN)
    print("KERNEL_OK")
</pallas_src>

<mosaic_0001>
module attributes {stable_mosaic.version = 11 : i64} {
  func.func @deeptcn_kernel(%arg0: memref<2x16x8xf32, #tpu.memory_space<vmem>>, %arg1: memref<2x8x4xf32, #tpu.memory_space<vmem>>, %arg2: memref<400x32xf32, #tpu.memory_space<vmem>>, %arg3: memref<16x32xf32, #tpu.memory_space<vmem>>, %arg4: memref<2x8x4xf32, #tpu.memory_space<vmem>>) attributes {dimension_semantics = [], scalar_prefetch = 0 : i64, scratch_operands = 0 : i64, tpu.core_type = #tpu.core_type<tc>} {
    %c0 = arith.constant 0 : index
    %c0_0 = arith.constant 0 : index
    %c0_1 = arith.constant 0 : index
    %0 = vector.load %arg0[%c0, %c0_0, %c0_1] : memref<2x16x8xf32, #tpu.memory_space<vmem>>, vector<2x16x8xf32>
    %c0_2 = arith.constant 0 : index
    %c0_3 = arith.constant 0 : index
    %1 = vector.load %arg2[%c0_2, %c0_3] : memref<400x32xf32, #tpu.memory_space<vmem>>, vector<8x32xf32>
    %2 = vector.extract_strided_slice %0 {offsets = [0, 0, 0], sizes = [1, 16, 8], strides = [1, 1, 1]} : vector<2x16x8xf32> to vector<1x16x8xf32>
    %3 = vector.shape_cast %2 : vector<1x16x8xf32> to vector<16x8xf32>
    %cst = arith.constant dense<0.000000e+00> : vector<16x32xf32>
    %4 = tpu.matmul %3, %1, %cst {dimension_numbers = #tpu.dot_dimension_numbers<[1], [0], [0], [1], [0, 0, 1, 1], [], []>} : vector<16x8xf32>, vector<8x32xf32>, vector<16x32xf32> -> vector<16x32xf32>
    %5 = vector.extract_strided_slice %0 {offsets = [1, 0, 0], sizes = [1, 16, 8], strides = [1, 1, 1]} : vector<2x16x8xf32> to vector<1x16x8xf32>
    %6 = vector.shape_cast %5 : vector<1x16x8xf32> to vector<16x8xf32>
    %cst_4 = arith.constant dense<0.000000e+00> : vector<16x32xf32>
    %7 = tpu.matmul %6, %1, %cst_4 {dimension_numbers = #tpu.dot_dimension_numbers<[1], [0], [0], [1], [0, 0, 1, 1], [], []>} : vector<16x8xf32>, vector<8x32xf32>, vector<16x32xf32> -> vector<16x32xf32>
    %8 = vector.shape_cast %4 : vector<16x32xf32> to vector<1x16x32xf32>
    %9 = vector.shape_cast %7 : vector<16x32xf32> to vector<1x16x32xf32>
    %10 = tpu.concatenate %8, %9 in 0 : vector<1x16x32xf32>, vector<1x16x32xf32> -> vector<2x16x32xf32>
    %c0_5 = arith.constant 0 : index
    %c0_6 = arith.constant 0 : index
    %11 = vector.load %arg3[%c0_5, %c0_6] : memref<16x32xf32, #tpu.memory_space<vmem>>, vector<1x32xf32>
    %12 = vector.shape_cast %11 : vector<1x32xf32> to vector<1x1x32xf32>
    %13 = vector.broadcast %12 : vector<1x1x32xf32> to vector<2x16x32xf32>
    %14 = arith.addf %10, %13 : vector<2x16x32xf32>
    %15 = vector.extract_strided_slice %14 {offsets = [0, 0, 0], sizes = [2, 15, 32], strides = [1, 1, 1]} : vector<2x16x32xf32> to vector<2x15x32xf32>
    %16 = vector.extract_strided_slice %14 {offsets = [0, 1, 0], sizes = [2, 15, 32], strides = [1, 1, 1]} : vector<2x16x32xf32> to vector<2x15x32xf32>
    %17 = tpu.concatenate %15, %16 in 2 : vector<2x15x32xf32>, vector<2x15x32xf32> -> vector<2x15x64xf32>
    %c16 = arith.constant 16 : index
    %c0_7 = arith.constant 0 : index
    %18 = vector.load %arg2[%c16, %c0_7] : memref<400x32xf32, #tpu.memory_space<vmem>>, vector<64x32xf32>
    %19 = vector.extract_strided_slice %17 {offsets = [0, 0, 0], sizes = [1, 15, 64], strides = [1, 1, 1]} : vector<2x15x64xf32> to vector<1x15x64xf32>
    %20 = vector.shape_cast %19 : vector<1x15x64xf32> to vector<15x64xf32>
    %cst_8 = arith.constant dense<0.000000e+00> : vector<15x32xf32>
    %21 = tpu.matmul %20, %18, %cst_8 {dimension_numbers = #tpu.dot_dimension_numbers<[1], [0], [0], [1], [0, 0, 1, 1], [], []>} : vector<15x64xf32>, vector<64x32xf32>, vector<15x32xf32> -> vector<15x32xf32>
    %22 = vector.extract_strided_slice %17 {offsets = [1, 0, 0], sizes = [1, 15, 64], strides = [1, 1, 1]} : vector<2x15x64xf32> to vector<1x15x64xf32>
    %23 = vector.shape_cast %22 : vector<1x15x64xf32> to vector<15x64xf32>
    %cst_9 = arith.constant dense<0.000000e+00> : vector<15x32xf32>
    %24 = tpu.matmul %23, %18, %cst_9 {dimension_numbers = #tpu.dot_dimension_numbers<[1], [0], [0], [1], [0, 0, 1, 1], [], []>} : vector<15x64xf32>, vector<64x32xf32>, vector<15x32xf32> -> vector<15x32xf32>
    %25 = vector.shape_cast %21 : vector<15x32xf32> to vector<1x15x32xf32>
    %26 = vector.shape_cast %24 : vector<15x32xf32> to vector<1x15x32xf32>
    %27 = tpu.concatenate %25, %26 in 0 : vector<1x15x32xf32>, vector<1x15x32xf32> -> vector<2x15x32xf32>
    %c1 = arith.constant 1 : index
    %c0_10 = arith.constant 0 : index
    %28 = vector.load %arg3[%c1, %c0_10] : memref<16x32xf32, #tpu.memory_space<vmem>>, vector<1x32xf32>
    %c2 = arith.constant 2 : index
    %c0_11 = arith.constant 0 : index
    %29 = vector.load %arg3[%c2, %c0_11] : memref<16x32xf32, #tpu.memory_space<vmem>>, vector<1x32xf32>
    %cst_12 = arith.constant dense<0.000000e+00> : vector<32xf32>
    %30 = vector.multi_reduction <add>, %27, %cst_12 [0, 1] : vector<2x15x32xf32> to vector<32xf32>
    %31 = vector.shape_cast %30 : vector<32xf32> to vector<1x1x32xf32>
    %32 = arith.mulf %27, %27 : vector<2x15x32xf32>
    %cst_13 = arith.constant dense<0.000000e+00> : vector<32xf32>
    %33 = vector.multi_reduction <add>, %32, %cst_13 [0, 1] : vector<2x15x32xf32> to vector<32xf32>
    %34 = vector.shape_cast %33 : vector<32xf32> to vector<1x1x32xf32>
    %cst_14 = arith.constant 0.0333333351 : f32
    %35 = vector.broadcast %cst_14 : f32 to vector<1x1x32xf32>
    %36 = arith.mulf %31, %35 : vector<1x1x32xf32>
    %cst_15 = arith.constant 0.0333333351 : f32
    %37 = vector.broadcast %cst_15 : f32 to vector<1x1x32xf32>
    %38 = arith.mulf %34, %37 : vector<1x1x32xf32>
    %39 = arith.mulf %36, %36 : vector<1x1x32xf32>
    %40 = arith.subf %38, %39 : vector<1x1x32xf32>
    %cst_16 = arith.constant 9.99999974E-6 : f32
    %41 = vector.broadcast %cst_16 : f32 to vector<1x1x32xf32>
    %42 = arith.addf %40, %41 : vector<1x1x32xf32>
    %43 = math.rsqrt %42 : vector<1x1x32xf32>
    %44 = vector.shape_cast %28 : vector<1x32xf32> to vector<1x1x32xf32>
    %45 = arith.mulf %43, %44 : vector<1x1x32xf32>
    %46 = arith.mulf %36, %45 : vector<1x1x32xf32>
    %47 = vector.shape_cast %29 : vector<1x32xf32> to vector<1x1x32xf32>
    %48 = arith.subf %47, %46 : vector<1x1x32xf32>
    %49 = vector.broadcast %45 : vector<1x1x32xf32> to vector<2x15x32xf32>
    %50 = arith.mulf %27, %49 : vector<2x15x32xf32>
    %51 = vector.broadcast %48 : vector<1x1x32xf32> to vector<2x15x32xf32>
    %52 = arith.addf %50, %51 : vector<2x15x32xf32>
    %cst_17 = arith.constant 0.000000e+00 : f32
    %53 = vector.broadcast %cst_17 : f32 to vector<2x15x32xf32>
    %54 = arith.maximumf %52, %53 : vector<2x15x32xf32>
    %55 = vector.extract_strided_slice %54 {offsets = [0, 0, 0], sizes = [2, 14, 32], strides = [1, 1, 1]} : vector<2x15x32xf32> to vector<2x14x32xf32>
    %56 = vector.extract_strided_slice %54 {offsets = [0, 1, 0], sizes = [2, 14, 32], strides = [1, 1, 1]} : vector<2x15x32xf32> to vector<2x14x32xf32>
    %57 = tpu.concatenate %55, %56 in 2 : vector<2x14x32xf32>, vector<2x14x32xf32> -> vector<2x14x64xf32>
    %c80 = arith.constant 80 : index
    %c0_18 = arith.constant 0 : index
    %58 = vector.load %arg2[%c80, %c0_18] : memref<400x32xf32, #tpu.memory_space<vmem>>, vector<64x32xf32>
    %59 = vector.extract_strided_slice %57 {offsets = [0, 0, 0], sizes = [1, 14, 64], strides = [1, 1, 1]} : vector<2x14x64xf32> to vector<1x14x64xf32>
    %60 = vector.shape_cast %59 : vector<1x14x64xf32> to vector<14x64xf32>
    %cst_19 = arith.constant dense<0.000000e+00> : vector<14x32xf32>
    %61 = tpu.matmul %60, %58, %cst_19 {dimension_numbers = #tpu.dot_dimension_numbers<[1], [0], [0], [1], [0, 0, 1, 1], [], []>} : vector<14x64xf32>, vector<64x32xf32>, vector<14x32xf32> -> vector<14x32xf32>
    %62 = vector.extract_strided_slice %57 {offsets = [1, 0, 0], sizes = [1, 14, 64], strides = [1, 1, 1]} : vector<2x14x64xf32> to vector<1x14x64xf32>
    %63 = vector.shape_cast %62 : vector<1x14x64xf32> to vector<14x64xf32>
    %cst_20 = arith.constant dense<0.000000e+00> : vector<14x32xf32>
    %64 = tpu.matmul %63, %58, %cst_20 {dimension_numbers = #tpu.dot_dimension_numbers<[1], [0], [0], [1], [0, 0, 1, 1], [], []>} : vector<14x64xf32>, vector<64x32xf32>, vector<14x32xf32> -> vector<14x32xf32>
    %65 = vector.shape_cast %61 : vector<14x32xf32> to vector<1x14x32xf32>
    %66 = vector.shape_cast %64 : vector<14x32xf32> to vector<1x14x32xf32>
    %67 = tpu.concatenate %65, %66 in 0 : vector<1x14x32xf32>, vector<1x14x32xf32> -> vector<2x14x32xf32>
    %c3 = arith.constant 3 : index
    %c0_21 = arith.constant 0 : index
    %68 = vector.load %arg3[%c3, %c0_21] : memref<16x32xf32, #tpu.memory_space<vmem>>, vector<1x32xf32>
    %c4 = arith.constant 4 : index
    %c0_22 = arith.constant 0 : index
    %69 = vector.load %arg3[%c4, %c0_22] : memref<16x32xf32, #tpu.memory_space<vmem>>, vector<1x32xf32>
    %cst_23 = arith.constant dense<0.000000e+00> : vector<32xf32>
    %70 = vector.multi_reduction <add>, %67, %cst_23 [0, 1] : vector<2x14x32xf32> to vector<32xf32>
    %71 = vector.shape_cast %70 : vector<32xf32> to vector<1x1x32xf32>
    %72 = arith.mulf %67, %67 : vector<2x14x32xf32>
    %cst_24 = arith.constant dense<0.000000e+00> : vector<32xf32>
    %73 = vector.multi_reduction <add>, %72, %cst_24 [0, 1] : vector<2x14x32xf32> to vector<32xf32>
    %74 = vector.shape_cast %73 : vector<32xf32> to vector<1x1x32xf32>
    %cst_25 = arith.constant 0.0357142873 : f32
    %75 = vector.broadcast %cst_25 : f32 to vector<1x1x32xf32>
    %76 = arith.mulf %71, %75 : vector<1x1x32xf32>
    %cst_26 = arith.constant 0.0357142873 : f32
    %77 = vector.broadcast %cst_26 : f32 to vector<1x1x32xf32>
    %78 = arith.mulf %74, %77 : vector<1x1x32xf32>
    %79 = arith.mulf %76, %76 : vector<1x1x32xf32>
    %80 = arith.subf %78, %79 : vector<1x1x32xf32>
    %cst_27 = arith.constant 9.99999974E-6 : f32
    %81 = vector.broadcast %cst_27 : f32 to vector<1x1x32xf32>
    %82 = arith.addf %80, %81 : vector<1x1x32xf32>
    %83 = math.rsqrt %82 : vector<1x1x32xf32>
    %84 = vector.shape_cast %68 : vector<1x32xf32> to vector<1x1x32xf32>
    %85 = arith.mulf %83, %84 : vector<1x1x32xf32>
    %86 = arith.mulf %76, %85 : vector<1x1x32xf32>
    %87 = vector.shape_cast %69 : vector<1x32xf32> to vector<1x1x32xf32>
    %88 = arith.subf %87, %86 : vector<1x1x32xf32>
    %89 = vector.broadcast %85 : vector<1x1x32xf32> to vector<2x14x32xf32>
    %90 = arith.mulf %67, %89 : vector<2x14x32xf32>
    %91 = vector.broadcast %88 : vector<1x1x32xf32> to vector<2x14x32xf32>
    %92 = arith.addf %90, %91 : vector<2x14x32xf32>
    %93 = vector.extract_strided_slice %14 {offsets = [0, 2, 0], sizes = [2, 14, 32], strides = [1, 1, 1]} : vector<2x16x32xf32> to vector<2x14x32xf32>
    %94 = arith.addf %92, %93 : vector<2x14x32xf32>
    %cst_28 = arith.constant 0.000000e+00 : f32
    %95 = vector.broadcast %cst_28 : f32 to vector<2x14x32xf32>
    %96 = arith.maximumf %94, %95 : vector<2x14x32xf32>
    %97 = vector.extract_strided_slice %96 {offsets = [0, 0, 0], sizes = [2, 12, 32], strides = [1, 1, 1]} : vector<2x14x32xf32> to vector<2x12x32xf32>
    %98 = vector.extract_strided_slice %96 {offsets = [0, 2, 0], sizes = [2, 12, 32], strides = [1, 1, 1]} : vector<2x14x32xf32> to vector<2x12x32xf32>
    %99 = tpu.concatenate %97, %98 in 2 : vector<2x12x32xf32>, vector<2x12x32xf32> -> vector<2x12x64xf32>
    %c144 = arith.constant 144 : index
    %c0_29 = arith.constant 0 : index
    %100 = vector.load %arg2[%c144, %c0_29] : memref<400x32xf32, #tpu.memory_space<vmem>>, vector<64x32xf32>
    %101 = vector.extract_strided_slice %99 {offsets = [0, 0, 0], sizes = [1, 12, 64], strides = [1, 1, 1]} : vector<2x12x64xf32> to vector<1x12x64xf32>
    %102 = vector.shape_cast %101 : vector<1x12x64xf32> to vector<12x64xf32>
    %cst_30 = arith.constant dense<0.000000e+00> : vector<12x32xf32>
    %103 = tpu.matmul %102, %100, %cst_30 {dimension_numbers = #tpu.dot_dimension_numbers<[1], [0], [0], [1], [0, 0, 1, 1], [], []>} : vector<12x64xf32>, vector<64x32xf32>, vector<12x32xf32> -> vector<12x32xf32>
    %104 = vector.extract_strided_slice %99 {offsets = [1, 0, 0], sizes = [1, 12, 64], strides = [1, 1, 1]} : vector<2x12x64xf32> to vector<1x12x64xf32>
    %105 = vector.shape_cast %104 : vector<1x12x64xf32> to vector<12x64xf32>
    %cst_31 = arith.constant dense<0.000000e+00> : vector<12x32xf32>
    %106 = tpu.matmul %105, %100, %cst_31 {dimension_numbers = #tpu.dot_dimension_numbers<[1], [0], [0], [1], [0, 0, 1, 1], [], []>} : vector<12x64xf32>, vector<64x32xf32>, vector<12x32xf32> -> vector<12x32xf32>
    %107 = vector.shape_cast %103 : vector<12x32xf32> to vector<1x12x32xf32>
    %108 = vector.shape_cast %106 : vector<12x32xf32> to vector<1x12x32xf32>
    %109 = tpu.concatenate %107, %108 in 0 : vector<1x12x32xf32>, vector<1x12x32xf32> -> vector<2x12x32xf32>
    %c5 = arith.constant 5 : index
    %c0_32 = arith.constant 0 : index
    %110 = vector.load %arg3[%c5, %c0_32] : memref<16x32xf32, #tpu.memory_space<vmem>>, vector<1x32xf32>
    %c6 = arith.constant 6 : index
    %c0_33 = arith.constant 0 : index
    %111 = vector.load %arg3[%c6, %c0_33] : memref<16x32xf32, #tpu.memory_space<vmem>>, vector<1x32xf32>
    %cst_34 = arith.constant dense<0.000000e+00> : vector<32xf32>
    %112 = vector.multi_reduction <add>, %109, %cst_34 [0, 1] : vector<2x12x32xf32> to vector<32xf32>
    %113 = vector.shape_cast %112 : vector<32xf32> to vector<1x1x32xf32>
    %114 = arith.mulf %109, %109 : vector<2x12x32xf32>
    %cst_35 = arith.constant dense<0.000000e+00> : vector<32xf32>
    %115 = vector.multi_reduction <add>, %114, %cst_35 [0, 1] : vector<2x12x32xf32> to vector<32xf32>
    %116 = vector.shape_cast %115 : vector<32xf32> to vector<1x1x32xf32>
    %cst_36 = arith.constant 0.0416666679 : f32
    %117 = vector.broadcast %cst_36 : f32 to vector<1x1x32xf32>
    %118 = arith.mulf %113, %117 : vector<1x1x32xf32>
    %cst_37 = arith.constant 0.0416666679 : f32
    %119 = vector.broadcast %cst_37 : f32 to vector<1x1x32xf32>
    %120 = arith.mulf %116, %119 : vector<1x1x32xf32>
    %121 = arith.mulf %118, %118 : vector<1x1x32xf32>
    %122 = arith.subf %120, %121 : vector<1x1x32xf32>
    %cst_38 = arith.constant 9.99999974E-6 : f32
    %123 = vector.broadcast %cst_38 : f32 to vector<1x1x32xf32>
    %124 = arith.addf %122, %123 : vector<1x1x32xf32>
    %125 = math.rsqrt %124 : vector<1x1x32xf32>
    %126 = vector.shape_cast %110 : vector<1x32xf32> to vector<1x1x32xf32>
    %127 = arith.mulf %125, %126 : vector<1x1x32xf32>
    %128 = arith.mulf %118, %127 : vector<1x1x32xf32>
    %129 = vector.shape_cast %111 : vector<1x32xf32> to vector<1x1x32xf32>
    %130 = arith.subf %129, %128 : vector<1x1x32xf32>
    %131 = vector.broadcast %127 : vector<1x1x32xf32> to vector<2x12x32xf32>
    %132 = arith.mulf %109, %131 : vector<2x12x32xf32>
    %133 = vector.broadcast %130 : vector<1x1x32xf32> to vector<2x12x32xf32>
    %134 = arith.addf %132, %133 : vector<2x12x32xf32>
    %cst_39 = arith.constant 0.000000e+00 : f32
    %135 = vector.broadcast %cst_39 : f32 to vector<2x12x32xf32>
    %136 = arith.maximumf %134, %135 : vector<2x12x32xf32>
    %137 = vector.extract_strided_slice %136 {offsets = [0, 0, 0], sizes = [2, 10, 32], strides = [1, 1, 1]} : vector<2x12x32xf32> to vector<2x10x32xf32>
    %138 = vector.extract_strided_slice %136 {offsets = [0, 2, 0], sizes = [2, 10, 32], strides = [1, 1, 1]} : vector<2x12x32xf32> to vector<2x10x32xf32>
    %139 = tpu.concatenate %137, %138 in 2 : vector<2x10x32xf32>, vector<2x10x32xf32> -> vector<2x10x64xf32>
    %c208 = arith.constant 208 : index
    %c0_40 = arith.constant 0 : index
    %140 = vector.load %arg2[%c208, %c0_40] : memref<400x32xf32, #tpu.memory_space<vmem>>, vector<64x32xf32>
    %141 = vector.extract_strided_slice %139 {offsets = [0, 0, 0], sizes = [1, 10, 64], strides = [1, 1, 1]} : vector<2x10x64xf32> to vector<1x10x64xf32>
    %142 = vector.shape_cast %141 : vector<1x10x64xf32> to vector<10x64xf32>
    %cst_41 = arith.constant dense<0.000000e+00> : vector<10x32xf32>
    %143 = tpu.matmul %142, %140, %cst_41 {dimension_numbers = #tpu.dot_dimension_numbers<[1], [0], [0], [1], [0, 0, 1, 1], [], []>} : vector<10x64xf32>, vector<64x32xf32>, vector<10x32xf32> -> vector<10x32xf32>
    %144 = vector.extract_strided_slice %139 {offsets = [1, 0, 0], sizes = [1, 10, 64], strides = [1, 1, 1]} : vector<2x10x64xf32> to vector<1x10x64xf32>
    %145 = vector.shape_cast %144 : vector<1x10x64xf32> to vector<10x64xf32>
    %cst_42 = arith.constant dense<0.000000e+00> : vector<10x32xf32>
    %146 = tpu.matmul %145, %140, %cst_42 {dimension_numbers = #tpu.dot_dimension_numbers<[1], [0], [0], [1], [0, 0, 1, 1], [], []>} : vector<10x64xf32>, vector<64x32xf32>, vector<10x32xf32> -> vector<10x32xf32>
    %147 = vector.shape_cast %143 : vector<10x32xf32> to vector<1x10x32xf32>
    %148 = vector.shape_cast %146 : vector<10x32xf32> to vector<1x10x32xf32>
    %149 = tpu.concatenate %147, %148 in 0 : vector<1x10x32xf32>, vector<1x10x32xf32> -> vector<2x10x32xf32>
    %c7 = arith.constant 7 : index
    %c0_43 = arith.constant 0 : index
    %150 = vector.load %arg3[%c7, %c0_43] : memref<16x32xf32, #tpu.memory_space<vmem>>, vector<1x32xf32>
    %c8 = arith.constant 8 : index
    %c0_44 = arith.constant 0 : index
    %151 = vector.load %arg3[%c8, %c0_44] : memref<16x32xf32, #tpu.memory_space<vmem>>, vector<1x32xf32>
    %cst_45 = arith.constant dense<0.000000e+00> : vector<32xf32>
    %152 = vector.multi_reduction <add>, %149, %cst_45 [0, 1] : vector<2x10x32xf32> to vector<32xf32>
    %153 = vector.shape_cast %152 : vector<32xf32> to vector<1x1x32xf32>
    %154 = arith.mulf %149, %149 : vector<2x10x32xf32>
    %cst_46 = arith.constant dense<0.000000e+00> : vector<32xf32>
    %155 = vector.multi_reduction <add>, %154, %cst_46 [0, 1] : vector<2x10x32xf32> to vector<32xf32>
    %156 = vector.shape_cast %155 : vector<32xf32> to vector<1x1x32xf32>
    %cst_47 = arith.constant 5.000000e-02 : f32
    %157 = vector.broadcast %cst_47 : f32 to vector<1x1x32xf32>
    %158 = arith.mulf %153, %157 : vector<1x1x32xf32>
    %cst_48 = arith.constant 5.000000e-02 : f32
    %159 = vector.broadcast %cst_48 : f32 to vector<1x1x32xf32>
    %160 = arith.mulf %156, %159 : vector<1x1x32xf32>
    %161 = arith.mulf %158, %158 : vector<1x1x32xf32>
    %162 = arith.subf %160, %161 : vector<1x1x32xf32>
    %cst_49 = arith.constant 9.99999974E-6 : f32
    %163 = vector.broadcast %cst_49 : f32 to vector<1x1x32xf32>
    %164 = arith.addf %162, %163 : vector<1x1x32xf32>
    %165 = math.rsqrt %164 : vector<1x1x32xf32>
    %166 = vector.shape_cast %150 : vector<1x32xf32> to vector<1x1x32xf32>
    %167 = arith.mulf %165, %166 : vector<1x1x32xf32>
    %168 = arith.mulf %158, %167 : vector<1x1x32xf32>
    %169 = vector.shape_cast %151 : vector<1x32xf32> to vector<1x1x32xf32>
    %170 = arith.subf %169, %168 : vector<1x1x32xf32>
    %171 = vector.broadcast %167 : vector<1x1x32xf32> to vector<2x10x32xf32>
    %172 = arith.mulf %149, %171 : vector<2x10x32xf32>
    %173 = vector.broadcast %170 : vector<1x1x32xf32> to vector<2x10x32xf32>
    %174 = arith.addf %172, %173 : vector<2x10x32xf32>
    %175 = vector.extract_strided_slice %96 {offsets = [0, 4, 0], sizes = [2, 10, 32], strides = [1, 1, 1]} : vector<2x14x32xf32> to vector<2x10x32xf32>
    %176 = arith.addf %174, %175 : vector<2x10x32xf32>
    %cst_50 = arith.constant 0.000000e+00 : f32
    %177 = vector.broadcast %cst_50 : f32 to vector<2x10x32xf32>
    %178 = arith.maximumf %176, %177 : vector<2x10x32xf32>
    %cst_51 = arith.constant dense<0.000000e+00> : vector<2x32xf32>
    %179 = vector.multi_reduction <add>, %178, %cst_51 [1] : vector<2x10x32xf32> to vector<2x32xf32>
    %180 = vector.shape_cast %179 : vector<2x32xf32> to vector<2x1x32xf32>
    %cst_52 = arith.constant 1.000000e+01 : f32
    %181 = vector.broadcast %cst_52 : f32 to vector<2x1x32xf32>
    %182 = arith.divf %180, %181 : vector<2x1x32xf32>
    %c0_53 = arith.constant 0 : index
    %c0_54 = arith.constant 0 : index
    %c0_55 = arith.constant 0 : index
    %183 = vector.load %arg1[%c0_53, %c0_54, %c0_55] : memref<2x8x4xf32, #tpu.memory_space<vmem>>, vector<2x8x4xf32>
    %c8_56 = arith.constant 8 : index
    %c0_57 = arith.constant 0 : index
    %184 = vector.load %arg2[%c8_56, %c0_57] : memref<400x32xf32, #tpu.memory_space<vmem>>, vector<4x32xf32>
    %185 = vector.extract_strided_slice %183 {offsets = [0, 0, 0], sizes = [1, 8, 4], strides = [1, 1, 1]} : vector<2x8x4xf32> to vector<1x8x4xf32>
    %186 = vector.shape_cast %185 : vector<1x8x4xf32> to vector<8x4xf32>
    %cst_58 = arith.constant dense<0.000000e+00> : vector<8x32xf32>
    %187 = tpu.matmul %186, %184, %cst_58 {dimension_numbers = #tpu.dot_dimension_numbers<[1], [0], [0], [1], [0, 0, 1, 1], [], []>} : vector<8x4xf32>, vector<4x32xf32>, vector<8x32xf32> -> vector<8x32xf32>
    %188 = vector.extract_strided_slice %183 {offsets = [1, 0, 0], sizes = [1, 8, 4], strides = [1, 1, 1]} : vector<2x8x4xf32> to vector<1x8x4xf32>
    %189 = vector.shape_cast %188 : vector<1x8x4xf32> to vector<8x4xf32>
    %cst_59 = arith.constant dense<0.000000e+00> : vector<8x32xf32>
    %190 = tpu.matmul %189, %184, %cst_59 {dimension_numbers = #tpu.dot_dimension_numbers<[1], [0], [0], [1], [0, 0, 1, 1], [], []>} : vector<8x4xf32>, vector<4x32xf32>, vector<8x32xf32> -> vector<8x32xf32>
    %191 = vector.shape_cast %187 : vector<8x32xf32> to vector<1x8x32xf32>
    %192 = vector.shape_cast %190 : vector<8x32xf32> to vector<1x8x32xf32>
    %193 = tpu.concatenate %191, %192 in 0 : vector<1x8x32xf32>, vector<1x8x32xf32> -> vector<2x8x32xf32>
    %c272 = arith.constant 272 : index
    %c0_60 = arith.constant 0 : index
    %194 = vector.load %arg2[%c272, %c0_60] : memref<400x32xf32, #tpu.memory_space<vmem>>, vector<32x32xf32>
    %195 = vector.extract_strided_slice %193 {offsets = [0, 0, 0], sizes = [1, 8, 32], strides = [1, 1, 1]} : vector<2x8x32xf32> to vector<1x8x32xf32>
    %196 = vector.shape_cast %195 : vector<1x8x32xf32> to vector<8x32xf32>
    %cst_61 = arith.constant dense<0.000000e+00> : vector<8x32xf32>
    %197 = tpu.matmul %196, %194, %cst_61 {dimension_numbers = #tpu.dot_dimension_numbers<[1], [0], [0], [1], [0, 0, 1, 1], [], []>} : vector<8x32xf32>, vector<32x32xf32>, vector<8x32xf32> -> vector<8x32xf32>
    %198 = vector.extract_strided_slice %193 {offsets = [1, 0, 0], sizes = [1, 8, 32], strides = [1, 1, 1]} : vector<2x8x32xf32> to vector<1x8x32xf32>
    %199 = vector.shape_cast %198 : vector<1x8x32xf32> to vector<8x32xf32>
    %cst_62 = arith.constant dense<0.000000e+00> : vector<8x32xf32>
    %200 = tpu.matmul %199, %194, %cst_62 {dimension_numbers = #tpu.dot_dimension_numbers<[1], [0], [0], [1], [0, 0, 1, 1], [], []>} : vector<8x32xf32>, vector<32x32xf32>, vector<8x32xf32> -> vector<8x32xf32>
    %201 = vector.shape_cast %197 : vector<8x32xf32> to vector<1x8x32xf32>
    %202 = vector.shape_cast %200 : vector<8x32xf32> to vector<1x8x32xf32>
    %203 = tpu.concatenate %201, %202 in 0 : vector<1x8x32xf32>, vector<1x8x32xf32> -> vector<2x8x32xf32>
    %c9 = arith.constant 9 : index
    %c0_63 = arith.constant 0 : index
    %204 = vector.load %arg3[%c9, %c0_63] : memref<16x32xf32, #tpu.memory_space<vmem>>, vector<1x32xf32>
    %c10 = arith.constant 10 : index
    %c0_64 = arith.constant 0 : index
    %205 = vector.load %arg3[%c10, %c0_64] : memref<16x32xf32, #tpu.memory_space<vmem>>, vector<1x32xf32>
    %cst_65 = arith.constant dense<0.000000e+00> : vector<32xf32>
    %206 = vector.multi_reduction <add>, %203, %cst_65 [0, 1] : vector<2x8x32xf32> to vector<32xf32>
    %207 = vector.shape_cast %206 : vector<32xf32> to vector<1x1x32xf32>
    %208 = arith.mulf %203, %203 : vector<2x8x32xf32>
    %cst_66 = arith.constant dense<0.000000e+00> : vector<32xf32>
    %209 = vector.multi_reduction <add>, %208, %cst_66 [0, 1] : vector<2x8x32xf32> to vector<32xf32>
    %210 = vector.shape_cast %209 : vector<32xf32> to vector<1x1x32xf32>
    %cst_67 = arith.constant 6.250000e-02 : f32
    %211 = vector.broadcast %cst_67 : f32 to vector<1x1x32xf32>
    %212 = arith.mulf %207, %211 : vector<1x1x32xf32>
    %cst_68 = arith.constant 6.250000e-02 : f32
    %213 = vector.broadcast %cst_68 : f32 to vector<1x1x32xf32>
    %214 = arith.mulf %210, %213 : vector<1x1x32xf32>
    %215 = arith.mulf %212, %212 : vector<1x1x32xf32>
    %216 = arith.subf %214, %215 : vector<1x1x32xf32>
    %cst_69 = arith.constant 9.99999974E-6 : f32
    %217 = vector.broadcast %cst_69 : f32 to vector<1x1x32xf32>
    %218 = arith.addf %216, %217 : vector<1x1x32xf32>
    %219 = math.rsqrt %218 : vector<1x1x32xf32>
    %220 = vector.shape_cast %204 : vector<1x32xf32> to vector<1x1x32xf32>
    %221 = arith.mulf %219, %220 : vector<1x1x32xf32>
    %222 = arith.mulf %212, %221 : vector<1x1x32xf32>
    %223 = vector.shape_cast %205 : vector<1x32xf32> to vector<1x1x32xf32>
    %224 = arith.subf %223, %222 : vector<1x1x32xf32>
    %225 = vector.broadcast %221 : vector<1x1x32xf32> to vector<2x8x32xf32>
    %226 = arith.mulf %203, %225 : vector<2x8x32xf32>
    %227 = vector.broadcast %224 : vector<1x1x32xf32> to vector<2x8x32xf32>
    %228 = arith.addf %226, %227 : vector<2x8x32xf32>
    %cst_70 = arith.constant 0.000000e+00 : f32
    %229 = vector.broadcast %cst_70 : f32 to vector<2x8x32xf32>
    %230 = arith.maximumf %228, %229 : vector<2x8x32xf32>
    %c304 = arith.constant 304 : index
    %c0_71 = arith.constant 0 : index
    %231 = vector.load %arg2[%c304, %c0_71] : memref<400x32xf32, #tpu.memory_space<vmem>>, vector<32x32xf32>
    %232 = vector.extract_strided_slice %230 {offsets = [0, 0, 0], sizes = [1, 8, 32], strides = [1, 1, 1]} : vector<2x8x32xf32> to vector<1x8x32xf32>
    %233 = vector.shape_cast %232 : vector<1x8x32xf32> to vector<8x32xf32>
    %cst_72 = arith.constant dense<0.000000e+00> : vector<8x32xf32>
    %234 = tpu.matmul %233, %231, %cst_72 {dimension_numbers = #tpu.dot_dimension_numbers<[1], [0], [0], [1], [0, 0, 1, 1], [], []>} : vector<8x32xf32>, vector<32x32xf32>, vector<8x32xf32> -> vector<8x32xf32>
    %235 = vector.extract_strided_slice %230 {offsets = [1, 0, 0], sizes = [1, 8, 32], strides = [1, 1, 1]} : vector<2x8x32xf32> to vector<1x8x32xf32>
    %236 = vector.shape_cast %235 : vector<1x8x32xf32> to vector<8x32xf32>
    %cst_73 = arith.constant dense<0.000000e+00> : vector<8x32xf32>
    %237 = tpu.matmul %236, %231, %cst_73 {dimension_numbers = #tpu.dot_dimension_numbers<[1], [0], [0], [1], [0, 0, 1, 1], [], []>} : vector<8x32xf32>, vector<32x32xf32>, vector<8x32xf32> -> vector<8x32xf32>
    %238 = vector.shape_cast %234 : vector<8x32xf32> to vector<1x8x32xf32>
    %239 = vector.shape_cast %237 : vector<8x32xf32> to vector<1x8x32xf32>
    %240 = tpu.concatenate %238, %239 in 0 : vector<1x8x32xf32>, vector<1x8x32xf32> -> vector<2x8x32xf32>
    %c11 = arith.constant 11 : index
    %c0_74 = arith.constant 0 : index
    %241 = vector.load %arg3[%c11, %c0_74] : memref<16x32xf32, #tpu.memory_space<vmem>>, vector<1x32xf32>
    %c12 = arith.constant 12 : index
    %c0_75 = arith.constant 0 : index
    %242 = vector.load %arg3[%c12, %c0_75] : memref<16x32xf32, #tpu.memory_space<vmem>>, vector<1x32xf32>
    %cst_76 = arith.constant dense<0.000000e+00> : vector<32xf32>
    %243 = vector.multi_reduction <add>, %240, %cst_76 [0, 1] : vector<2x8x32xf32> to vector<32xf32>
    %244 = vector.shape_cast %243 : vector<32xf32> to vector<1x1x32xf32>
    %245 = arith.mulf %240, %240 : vector<2x8x32xf32>
    %cst_77 = arith.constant dense<0.000000e+00> : vector<32xf32>
    %246 = vector.multi_reduction <add>, %245, %cst_77 [0, 1] : vector<2x8x32xf32> to vector<32xf32>
    %247 = vector.shape_cast %246 : vector<32xf32> to vector<1x1x32xf32>
    %cst_78 = arith.constant 6.250000e-02 : f32
    %248 = vector.broadcast %cst_78 : f32 to vector<1x1x32xf32>
    %249 = arith.mulf %244, %248 : vector<1x1x32xf32>
    %cst_79 = arith.constant 6.250000e-02 : f32
    %250 = vector.broadcast %cst_79 : f32 to vector<1x1x32xf32>
    %251 = arith.mulf %247, %250 : vector<1x1x32xf32>
    %252 = arith.mulf %249, %249 : vector<1x1x32xf32>
    %253 = arith.subf %251, %252 : vector<1x1x32xf32>
    %cst_80 = arith.constant 9.99999974E-6 : f32
    %254 = vector.broadcast %cst_80 : f32 to vector<1x1x32xf32>
    %255 = arith.addf %253, %254 : vector<1x1x32xf32>
    %256 = math.rsqrt %255 : vector<1x1x32xf32>
    %257 = vector.shape_cast %241 : vector<1x32xf32> to vector<1x1x32xf32>
    %258 = arith.mulf %256, %257 : vector<1x1x32xf32>
    %259 = arith.mulf %249, %258 : vector<1x1x32xf32>
    %260 = vector.shape_cast %242 : vector<1x32xf32> to vector<1x1x32xf32>
    %261 = arith.subf %260, %259 : vector<1x1x32xf32>
    %262 = vector.broadcast %258 : vector<1x1x32xf32> to vector<2x8x32xf32>
    %263 = arith.mulf %240, %262 : vector<2x8x32xf32>
    %264 = vector.broadcast %261 : vector<1x1x32xf32> to vector<2x8x32xf32>
    %265 = arith.addf %263, %264 : vector<2x8x32xf32>
    %cst_81 = arith.constant 0.000000e+00 : f32
    %266 = vector.broadcast %cst_81 : f32 to vector<2x1x32xf32>
    %267 = arith.maximumf %182, %266 : vector<2x1x32xf32>
    %c336 = arith.constant 336 : index
    %c0_82 = arith.constant 0 : index
    %268 = vector.load %arg2[%c336, %c0_82] : memref<400x32xf32, #tpu.memory_space<vmem>>, vector<32x32xf32>
    %269 = vector.extract_strided_slice %267 {offsets = [0, 0, 0], sizes = [1, 1, 32], strides = [1, 1, 1]} : vector<2x1x32xf32> to vector<1x1x32xf32>
    %270 = vector.shape_cast %269 : vector<1x1x32xf32> to vector<1x32xf32>
    %cst_83 = arith.constant dense<0.000000e+00> : vector<1x32xf32>
    %271 = tpu.matmul %270, %268, %cst_83 {dimension_numbers = #tpu.dot_dimension_numbers<[1], [0], [0], [1], [0, 0, 1, 1], [], []>} : vector<1x32xf32>, vector<32x32xf32>, vector<1x32xf32> -> vector<1x32xf32>
    %272 = vector.extract_strided_slice %267 {offsets = [1, 0, 0], sizes = [1, 1, 32], strides = [1, 1, 1]} : vector<2x1x32xf32> to vector<1x1x32xf32>
    %273 = vector.shape_cast %272 : vector<1x1x32xf32> to vector<1x32xf32>
    %cst_84 = arith.constant dense<0.000000e+00> : vector<1x32xf32>
    %274 = tpu.matmul %273, %268, %cst_84 {dimension_numbers = #tpu.dot_dimension_numbers<[1], [0], [0], [1], [0, 0, 1, 1], [], []>} : vector<1x32xf32>, vector<32x32xf32>, vector<1x32xf32> -> vector<1x32xf32>
    %275 = vector.shape_cast %271 : vector<1x32xf32> to vector<1x1x32xf32>
    %276 = vector.shape_cast %274 : vector<1x32xf32> to vector<1x1x32xf32>
    %277 = tpu.concatenate %275, %276 in 0 : vector<1x1x32xf32>, vector<1x1x32xf32> -> vector<2x1x32xf32>
    %cst_85 = arith.constant 0.000000e+00 : f32
    %278 = vector.broadcast %cst_85 : f32 to vector<2x8x32xf32>
    %279 = arith.maximumf %265, %278 : vector<2x8x32xf32>
    %c368 = arith.constant 368 : index
    %c0_86 = arith.constant 0 : index
    %280 = vector.load %arg2[%c368, %c0_86] : memref<400x32xf32, #tpu.memory_space<vmem>>, vector<32x32xf32>
    %281 = vector.extract_strided_slice %279 {offsets = [0, 0, 0], sizes = [1, 8, 32], strides = [1, 1, 1]} : vector<2x8x32xf32> to vector<1x8x32xf32>
    %282 = vector.shape_cast %281 : vector<1x8x32xf32> to vector<8x32xf32>
    %cst_87 = arith.constant dense<0.000000e+00> : vector<8x32xf32>
    %283 = tpu.matmul %282, %280, %cst_87 {dimension_numbers = #tpu.dot_dimension_numbers<[1], [0], [0], [1], [0, 0, 1, 1], [], []>} : vector<8x32xf32>, vector<32x32xf32>, vector<8x32xf32> -> vector<8x32xf32>
    %284 = vector.extract_strided_slice %279 {offsets = [1, 0, 0], sizes = [1, 8, 32], strides = [1, 1, 1]} : vector<2x8x32xf32> to vector<1x8x32xf32>
    %285 = vector.shape_cast %284 : vector<1x8x32xf32> to vector<8x32xf32>
    %cst_88 = arith.constant dense<0.000000e+00> : vector<8x32xf32>
    %286 = tpu.matmul %285, %280, %cst_88 {dimension_numbers = #tpu.dot_dimension_numbers<[1], [0], [0], [1], [0, 0, 1, 1], [], []>} : vector<8x32xf32>, vector<32x32xf32>, vector<8x32xf32> -> vector<8x32xf32>
    %287 = vector.shape_cast %283 : vector<8x32xf32> to vector<1x8x32xf32>
    %288 = vector.shape_cast %286 : vector<8x32xf32> to vector<1x8x32xf32>
    %289 = tpu.concatenate %287, %288 in 0 : vector<1x8x32xf32>, vector<1x8x32xf32> -> vector<2x8x32xf32>
    %290 = vector.broadcast %277 : vector<2x1x32xf32> to vector<2x8x32xf32>
    %291 = arith.addf %290, %289 : vector<2x8x32xf32>
    %c13 = arith.constant 13 : index
    %c0_89 = arith.constant 0 : index
    %292 = vector.load %arg3[%c13, %c0_89] : memref<16x32xf32, #tpu.memory_space<vmem>>, vector<1x32xf32>
    %293 = vector.shape_cast %292 : vector<1x32xf32> to vector<1x1x32xf32>
    %294 = vector.broadcast %293 : vector<1x1x32xf32> to vector<2x8x32xf32>
    %295 = arith.addf %291, %294 : vector<2x8x32xf32>
    %296 = vector.extract_strided_slice %295 {offsets = [0, 0, 0], sizes = [2, 8, 4], strides = [1, 1, 1]} : vector<2x8x32xf32> to vector<2x8x4xf32>
    %c0_90 = arith.constant 0 : index
    %c0_91 = arith.constant 0 : index
    %c0_92 = arith.constant 0 : index
    %297 = vector.load %arg4[%c0_90, %c0_91, %c0_92] : memref<2x8x4xf32, #tpu.memory_space<vmem>>, vector<2x8x4xf32>
    tpu.vector_store %arg4[%c0_90, %c0_91, %c0_92], %296 {strides = array<i32>} : memref<2x8x4xf32, #tpu.memory_space<vmem>>, vector<2x8x4xf32>,
    return
  }
}

</mosaic_0001>

<bundles_post_ra>
// kernel: deeptcn_forward.1
= control target key start
LH: loop header
LB: loop body
LE: loop exit
PB: predicated region body
PF: predicated region fallthrough
CT: control target
= control target key end

     0   :  { %vm22_vm0 = vcmask 64512   ;;  %vm198_vm1 = vcmask 1046528   ;;  %s2764_s16 = smov 32   ;;  %vm217_vm2 = vcmask 261120   ;;  %vm230_vm3 = vcmask 523264   ;;  %s3221_s2 = inlined_call_operand.vmem [shape: f32[400,32], index: 2, kind: input, shape index: {}]   ;;  %s3222_s0 = inlined_call_operand.vmem [shape: f32[2,16,8], index: 0, kind: input, shape index: {}]   ;;  %s3223_s3 = inlined_call_operand.vmem [shape: f32[16,32], index: 3, kind: input, shape index: {}]   ;;  %s3224_s1 = inlined_call_operand.vmem [shape: f32[2,8,4], index: 1, kind: input, shape index: {}]   ;;  %s3225_s4 = inlined_call_operand.vmem [shape: f32[2,8,4], index: 4, kind: output, shape index: {}]  }
   0x1   :  { %v21_v0 = vld [vmem:[%s3221_s2] sm:$0xff]  ;;  %v19_v2 = vld [vmem:[%s3222_s0 + $0x10] sm:$0xff]  ;;  %v18_v3 = vld [vmem:[%s3222_s0 + $0x8] sm:$0xff]  ;;  %vm396_vm4 = vcmask 260096   ;;  %vm654_vm5 = vcmask 259072   ;;  %vm709_vm6 = vcmask 1045504  }
   0x2   :  { %v17_v1 = vld [vmem:[%s3222_s0] sm:$0xff]  ;;  %2312 = vmatprep.subr.mxu0 %v21_v0  ;;  %2317 = vmatprep.subr.mxu1 %v21_v0  ;;  %v20_v4 = vld [vmem:[%s3222_s0 + $0x18] sm:$0xff]  ;;  %v222_v5 = vld [vmem:[%s3221_s2 + $0x10] sm:$0xff]  ;;  %vm927_vm7 = vcmask 257024   ;;  %vm1240_vm8 = vcmask 1043456   ;;  %vm1283_vm9 = vcmask 31744  }
   0x3   :  { %2313 = vmatpush3.msra.mxu0 %v21_v0  ;;  %2314 = vmatprep.mubr.msk.f32.mxu0 %vm22_vm0, %v17_v1  ;;  %v223_v6 = vld [vmem:[%s3221_s2 + $0x18] sm:$0xff]  ;;  %v224_v7 = vld [vmem:[%s3221_s2 + $0x20] sm:$0xff]  ;;  %v225_v9 = vld [vmem:[%s3221_s2 + $0x28] sm:$0xff]  ;;  %vm2766_vm10 = vmmov 0   ;;  %vm1185_vm11 = vcmask 254976  }
   0x4   :  { %2318 = vmatpush3.msra.mxu1 %v21_v0  ;;  %2319 = vmatprep.mubr.msk.f32.mxu1 %vm22_vm0, %v19_v2  ;;  %v2572_v8 = vpack.c.bf16 %v223_v6, %v222_v5  ;;  %v2576_v10 = vpack.c.bf16 %v225_v9, %v224_v7  ;;  %v226_v11 = vld [vmem:[%s3221_s2 + $0x30] sm:$0xff]  ;;  %v227_v12 = vld [vmem:[%s3221_s2 + $0x38] sm:$0xff]  ;;  %v228_v14 = vld [vmem:[%s3221_s2 + $0x40] sm:$0xff] }
   0x5   :  { %2315 = vmatmul.mubr.msk.f32.vlgmr.msra.gmra.mrb[0].mxu0 %vm22_vm0, %v18_v3  ;;  %2320 = vmatmul.mubr.msk.f32.vlgmr.msra.gmra.mrb[0].mxu1 %vm22_vm0, %v20_v4  ;;  %v2580_v13 = vpack.c.bf16 %v227_v12, %v226_v11  ;;  %v229_v15 = vld [vmem:[%s3221_s2 + $0x48] sm:$0xff]  ;;  %v2152_v17 = vld [vmem:[%s3223_s3] ss:$0 sm:$0xff]  ;;  %v481_v40 = vld [vmem:[%s3221_s2 + $0x50] sm:$0xff] }
   0x6   :  { %2573 = vmatprep.subr.bf16.mxu0 %v2572_v8  ;;  %2589 = vmatprep.subr.bf16.mxu1 %v2572_v8  ;;  %v2584_v16 = vpack.c.bf16 %v229_v15, %v228_v14  ;;  %v482_v41 = vld [vmem:[%s3221_s2 + $0x58] sm:$0xff]  ;;  %v483_v42 = vld [vmem:[%s3221_s2 + $0x60] sm:$0xff]  ;;  %v484_v44 = vld [vmem:[%s3221_s2 + $0x68] sm:$0xff] }
   0x7   :  { %2575 = vmatpush3.bf16.msra.mxu0 %v2572_v8  ;;  %2591 = vmatpush3.bf16.msra.mxu1 %v2572_v8  ;;  %v2604_v43 = vpack.c.bf16 %v482_v41, %v481_v40  ;;  %v2608_v45 = vpack.c.bf16 %v484_v44, %v483_v42  ;;  %v485_v46 = vld [vmem:[%s3221_s2 + $0x70] sm:$0xff]  ;;  %v486_v47 = vld [vmem:[%s3221_s2 + $0x78] sm:$0xff]  ;;  %v487_v49 = vld [vmem:[%s3221_s2 + $0x80] sm:$0xff] }
   0x8   :  { %2577 = vmatprep.subr.bf16.mxu0 %v2576_v10  ;;  %2593 = vmatprep.subr.bf16.mxu1 %v2576_v10  ;;  %v2612_v48 = vpack.c.bf16 %v486_v47, %v485_v46  ;;  %v488_v50 = vld [vmem:[%s3221_s2 + $0x88] sm:$0xff] }
   0x9   :  { %v2616_v51 = vpack.c.bf16 %v488_v50, %v487_v49 }
   0xb   :  { %2579 = vmatpush3.bf16.msra.mxu0 %v2576_v10  ;;  %2595 = vmatpush3.bf16.msra.mxu1 %v2576_v10 }
   0xc   :  { %2581 = vmatprep.subr.bf16.mxu0 %v2580_v13  ;;  %2597 = vmatprep.subr.bf16.mxu1 %v2580_v13 }
   0xf   :  { %2583 = vmatpush3.bf16.msra.mxu0 %v2580_v13  ;;  %2599 = vmatpush3.bf16.msra.mxu1 %v2580_v13 }
  0x10   :  { %2585 = vmatprep.subr.bf16.mxu0 %v2584_v16  ;;  %2601 = vmatprep.subr.bf16.mxu1 %v2584_v16 }
  0x13   :  { %2587 = vmatpush3.bf16.msra.mxu0 %v2584_v16  ;;  %2603 = vmatpush3.bf16.msra.mxu1 %v2584_v16 }
  0x14   :  { %2605 = vmatprep.subr.bf16.mxu0 %v2604_v43  ;;  %2621 = vmatprep.subr.bf16.mxu1 %v2604_v43 }
  0xd8   :  { %v2316_v18 = vpop.f32.mrb[0].mxu0  ;;  %v2321_v19 = vpop.f32.mrb[0].mxu1 }
  0xd9   :  { %v2835_v20 = vadd.f32 %v2316_v18, %v2152_v17  ;;  %v2837_v21 = vadd.f32 %v2321_v19, %v2152_v17  ;;  %v95_v22 = vpop.f32.mrb[1].mxu0  ;;  %v176_v23 = vpop.f32.mrb[1].mxu1 }
  0xda   :  { %v2839_v24 = vadd.f32 %v2152_v17, %v95_v22  ;;  %v2841_v25 = vadd.f32 %v2152_v17, %v176_v23 }
  0xdb   :  { %v203_v26 = vrot.slane %v2837_v21, 1  ;;  %v200_v27 = vrot.slane %v2835_v20, 1 }
  0xdc   :  { %v202_v28 = vrot.slane %v2841_v25, 1  ;;  %v199_v29 = vrot.slane %v2839_v24, 1 }
  0xde   :  { %v204_v30 = vsel %vm198_vm1, %v202_v28, %v203_v26  ;;  %v201_v31 = vsel %vm198_vm1, %v199_v29, %v200_v27 }
  0xdf   :  { %209 = vrot.lane.b32.xlu1 %v204_v30, %s2764_s16  ;;  %205 = vrot.lane.b32.xlu0 %v201_v31, %s2764_s16  ;;  %v435_v31 = vlaneseq }
  0xe3   :  { %211 = vrot.lane.b32.xlu1 %v203_v26, %s2764_s16  ;;  %207 = vrot.lane.b32.xlu0 %v200_v27, %s2764_s16 }
 0x151   :  { %v210_v32 = vpop.permute.xlu1 %209  ;;  %v206_v33 = vpop.permute.xlu0 %205 }
 0x152   :  { %v220_v34 = vsel %vm217_vm2, %v2841_v25, %v210_v32  ;;  %v218_v35 = vsel %vm217_vm2, %v2839_v24, %v206_v33  ;;  %v436_v32 = vshrl.u32 %v435_v31, 7  ;;  %v393_v33 = vld [vmem:[%s3223_s3 + $0x1] sm:$0x1] }
 0x153   :  { %2338 = vmatprep.mubr.msk.f32.mxu0 %vm230_vm3, %v218_v35  ;;  %2357 = vmatprep.mubr.msk.f32.mxu1 %vm230_vm3, %v220_v34 }
 0x154   :  { %v2900_v34 = vsub.s32 0, %v436_v32 }
 0x155   :  { %v212_v36 = vpop.permute.xlu1 %211  ;;  %v208_v37 = vpop.permute.xlu0 %207 }
 0x156   :  { %v221_v38 = vsel %vm217_vm2, %v2837_v21, %v212_v36  ;;  %v219_v39 = vsel %vm217_vm2, %v2835_v20, %v208_v37  ;;  %v394_v37 = vld [vmem:[%s3223_s3 + $0x2] sm:$0x1] }
 0x157   :  { %2339 = vmatmul.mubr.msk.f32.vlgmr.msra.gmra.mrb[2].mxu0 %vm230_vm3, %v219_v39  ;;  %2358 = vmatmul.mubr.msk.f32.vlgmr.msra.gmra.mrb[2].mxu1 %vm230_vm3, %v221_v38 }
 0x158   :  { %2607 = vmatpush3.bf16.msra.mxu0 %v2604_v43  ;;  %2623 = vmatpush3.bf16.msra.mxu1 %v2604_v43 }
 0x159   :  { %2609 = vmatprep.subr.bf16.mxu0 %v2608_v45  ;;  %2625 = vmatprep.subr.bf16.mxu1 %v2608_v45 }
 0x15c   :  { %2611 = vmatpush3.bf16.msra.mxu0 %v2608_v45  ;;  %2627 = vmatpush3.bf16.msra.mxu1 %v2608_v45 }
 0x15d   :  { %2613 = vmatprep.subr.bf16.mxu0 %v2612_v48  ;;  %2629 = vmatprep.subr.bf16.mxu1 %v2612_v48 }
 0x160   :  { %2615 = vmatpush3.bf16.msra.mxu0 %v2612_v48  ;;  %2631 = vmatpush3.bf16.msra.mxu1 %v2612_v48 }
 0x161   :  { %2617 = vmatprep.subr.bf16.mxu0 %v2616_v51  ;;  %2633 = vmatprep.subr.bf16.mxu1 %v2616_v51 }
 0x164   :  { %2619 = vmatpush3.bf16.msra.mxu0 %v2616_v51  ;;  %2635 = vmatpush3.bf16.msra.mxu1 %v2616_v51 }
 0x22a   :  { %v2340_v52 = vpop.f32.mrb[2].mxu0  ;;  %v2359_v53 = vpop.f32.mrb[2].mxu1 }
 0x22b   :  { %v397_v54 = vsel %vm396_vm4, %v2340_v52, 0.0  ;;  %v410_v55 = vmul.f32 %v2340_v52, %v2340_v52  ;;  %v303_v56 = vpop.f32.mrb[3].mxu0  ;;  %v384_v57 = vpop.f32.mrb[3].mxu1  ;;  %v412_v63 = vmul.f32 %v2359_v53, %v2359_v53  ;;  %v401_v4 = vsel %vm396_vm4, %v2359_v53, 0.0 }
 0x22c   :  { %v395_v58 = vsel %vm217_vm2, %v303_v56, 0.0  ;;  %v409_v59 = vmul.f32 %v303_v56, %v303_v56  ;;  %v411_v60 = vmul.f32 %v384_v57, %v384_v57  ;;  %v399_v1 = vsel %vm217_vm2, %v384_v57, 0.0 }
 0x22d   :  { %v414_v61 = vsel %vm396_vm4, %v410_v55, 0.0  ;;  %v398_v62 = vadd.f32 %v397_v54, %v395_v58  ;;  %v418_v8 = vsel %vm396_vm4, %v412_v63, 0.0 }
 0x22e   :  { %v413_v0 = vsel %vm217_vm2, %v409_v59, 0.0  ;;  %v416_v5 = vsel %vm217_vm2, %v411_v60, 0.0 }
 0x22f   :  { %v415_v2 = vadd.f32 %v414_v61, %v413_v0  ;;  %v400_v3 = vadd.f32 %v399_v1, %v398_v62 }
 0x231   :  { %v402_v6 = vadd.f32 %v401_v4, %v400_v3  ;;  %v417_v7 = vadd.f32 %v416_v5, %v415_v2  ;;  %v754_v4 = vld [vmem:[%s3221_s2 + $0x90] sm:$0xff]  ;;  %v755_v5 = vld [vmem:[%s3221_s2 + $0x98] sm:$0xff] }
 0x233   :  { %v403_v9 = vrot.slane %v402_v6, 4  ;;  %v419_v10 = vadd.f32 %v418_v8, %v417_v7  ;;  %v2636_v7 = vpack.c.bf16 %v755_v5, %v754_v4  ;;  %v757_v8 = vld [vmem:[%s3221_s2 + $0xa8] sm:$0xff] }
 0x235   :  { %v404_v11 = vadd.f32 %v403_v9, %v402_v6  ;;  %v420_v12 = vrot.slane %v419_v10, 4  ;;  %v756_v6 = vld [vmem:[%s3221_s2 + $0xa0] sm:$0xff]  ;;  %2637 = vmatprep.subr.bf16.mxu0 %v2636_v7  ;;  %2653 = vmatprep.subr.bf16.mxu1 %v2636_v7 }
 0x236   :  { %v2640_v9 = vpack.c.bf16 %v757_v8, %v756_v6  ;;  %v710_v8 = vrot.slane %v2839_v24, 2 }
 0x237   :  { %v405_v13 = vrot.slane %v404_v11, 2  ;;  %v421_v14 = vadd.f32 %v420_v12, %v419_v10  ;;  %v758_v10 = vld [vmem:[%s3221_s2 + $0xb0] sm:$0xff] }
 0x239   :  { %v406_v15 = vadd.f32 %v405_v13, %v404_v11  ;;  %v422_v16 = vrot.slane %v421_v14, 2  ;;  %v759_v11 = vld [vmem:[%s3221_s2 + $0xb8] sm:$0xff]  ;;  %v760_v13 = vld [vmem:[%s3221_s2 + $0xc0] sm:$0xff] }
 0x23a   :  { %v2644_v12 = vpack.c.bf16 %v759_v11, %v758_v10 }
 0x23b   :  { %v407_v17 = vrot.slane %v406_v15, 1  ;;  %v423_v18 = vadd.f32 %v422_v16, %v421_v14  ;;  %v761_v14 = vld [vmem:[%s3221_s2 + $0xc8] sm:$0xff] }
 0x23d   :  { %v408_v19 = vadd.f32 %v407_v17, %v406_v15  ;;  %v424_v22 = vrot.slane %v423_v18, 1  ;;  %v2648_v15 = vpack.c.bf16 %v761_v14, %v760_v13 }
 0x23f   :  { %v425_v23 = vadd.f32 %v424_v22, %v423_v18  ;;  %v426_v26 = vmul.f32 0.033333335, %v408_v19 }
 0x241   :  { %v427_v27 = vmul.f32 0.033333335, %v425_v23  ;;  %v428_v28 = vmul.f32 %v426_v26, %v426_v26 }
 0x243   :  { %v429_v29 = vsub.f32 %v427_v27, %v428_v28 }
 0x245   :  { %v430_v30 = vadd.f32 1e-05, %v429_v29 }
 0x247   :  { %2752 = vrsqrt.f32 %v430_v30 }
 0x251   :  { %v2753_v35 = vpop.eup %2752 }
 0x252   :  { %v432_v36 = vmul.f32 %v2753_v35, %v393_v33 }
 0x254   :  { %v433_v38 = vmul.f32 %v432_v36, %v426_v26  ;;  %v438_v39 = vrot.slane %v432_v36, %v2900_v34 }
 0x256   :  { %v434_v40 = vsub.f32 %v394_v37, %v433_v38  ;;  %v441_v41 = vmul.f32 %v438_v39, %v384_v57  ;;  %v440_v42 = vmul.f32 %v2340_v52, %v438_v39  ;;  %v439_v43 = vmul.f32 %v438_v39, %v303_v56 }
 0x257   :  { %v442_v44 = vmul.f32 %v2359_v53, %v438_v39 }
 0x258   :  { %v446_v45 = vrot.slane %v434_v40, %v2900_v34 }
 0x25a   :  { %v449_v46 = vadd.f32 %v446_v45, %v441_v41  ;;  %v448_v47 = vadd.f32 %v446_v45, %v440_v42  ;;  %v447_v48 = vadd.f32 %v446_v45, %v439_v43  ;;  %v450_v49 = vadd.f32 %v446_v45, %v442_v44 }
 0x25c   :  { %v453_v50 = vmax.f32 %v449_v46, 0.0  ;;  %v452_v51 = vmax.f32 %v448_v47, 0.0  ;;  %v451_v54 = vmax.f32 %v447_v48, 0.0  ;;  %v454_v55 = vmax.f32 %v450_v49, 0.0 }
 0x25e   :  { %v460_v58 = vrot.slane %v452_v51, 1  ;;  %v459_v59 = vrot.slane %v451_v54, 1  ;;  %v463_v57 = vrot.slane %v454_v55, 1  ;;  %v462_v52 = vrot.slane %v453_v50, 1 }
 0x260   :  { %467 = vrot.lane.b32.xlu1 %v460_v58, %s2764_s16  ;;  %v461_v60 = vsel %vm198_vm1, %v459_v59, %v460_v58  ;;  %v464_v53 = vsel %vm198_vm1, %v462_v52, %v463_v57 }
 0x261   :  { %465 = vrot.lane.b32.xlu0 %v461_v60, %s2764_s16 }
 0x264   :  { %471 = vrot.lane.b32.xlu1 %v463_v57, %s2764_s16 }
 0x265   :  { %469 = vrot.lane.b32.xlu0 %v464_v53, %s2764_s16 }
 0x2d2   :  { %v468_v56 = vpop.permute.xlu1 %467 }
 0x2d3   :  { %v466_v61 = vpop.permute.xlu0 %465  ;;  %v478_v63 = vsel %vm217_vm2, %v452_v51, %v468_v56  ;;  %v651_v56 = vld [vmem:[%s3223_s3 + $0x3] sm:$0x1] }
 0x2d4   :  { %v477_v62 = vsel %vm217_vm2, %v451_v54, %v466_v61 }
 0x2d5   :  { %2376 = vmatprep.mubr.msk.f32.mxu0 %vm230_vm3, %v477_v62 }
 0x2d6   :  { %v472_v0 = vpop.permute.xlu1 %471  ;;  %2377 = vmatmul.mubr.msk.f32.vlgmr.msra.gmra.mrb[4].mxu0 %vm230_vm3, %v478_v63  ;;  %v652_v63 = vld [vmem:[%s3223_s3 + $0x4] sm:$0x1] }
 0x2d7   :  { %v470_v1 = vpop.permute.xlu0 %469  ;;  %v480_v3 = vsel %vm217_vm2, %v454_v55, %v472_v0  ;;  %2639 = vmatpush3.bf16.msra.mxu0 %v2636_v7 }
 0x2d8   :  { %v479_v2 = vsel %vm217_vm2, %v453_v50, %v470_v1  ;;  %2641 = vmatprep.subr.bf16.mxu0 %v2640_v9 }
 0x2d9   :  { %2395 = vmatprep.mubr.msk.f32.mxu1 %vm230_vm3, %v479_v2  ;;  %v711_v2 = vrot.slane %v2835_v20, 2 }
 0x2da   :  { %2396 = vmatmul.mubr.msk.f32.vlgmr.msra.gmra.mrb[4].mxu1 %vm230_vm3, %v480_v3 }
 0x2db   :  { %2655 = vmatpush3.bf16.msra.mxu1 %v2636_v7  ;;  %2643 = vmatpush3.bf16.msra.mxu0 %v2640_v9  ;;  %v714_v7 = vrot.slane %v2837_v21, 2  ;;  %v712_v20 = vsel %vm709_vm6, %v710_v8, %v711_v2 }
 0x2dc   :  { %2657 = vmatprep.subr.bf16.mxu1 %v2640_v9  ;;  %2645 = vmatprep.subr.bf16.mxu0 %v2644_v12 }
 0x2df   :  { %2659 = vmatpush3.bf16.msra.mxu1 %v2640_v9  ;;  %2647 = vmatpush3.bf16.msra.mxu0 %v2644_v12  ;;  %v713_v9 = vrot.slane %v2841_v25, 2 }
 0x2e0   :  { %2661 = vmatprep.subr.bf16.mxu1 %v2644_v12  ;;  %2649 = vmatprep.subr.bf16.mxu0 %v2648_v15 }
 0x2e3   :  { %2663 = vmatpush3.bf16.msra.mxu1 %v2644_v12  ;;  %2651 = vmatpush3.bf16.msra.mxu0 %v2648_v15 }
 0x2e4   :  { %2665 = vmatprep.subr.bf16.mxu1 %v2648_v15 }
 0x2e7   :  { %2667 = vmatpush3.bf16.msra.mxu1 %v2648_v15 }
 0x3a9   :  { %v2378_v16 = vpop.f32.mrb[4].mxu0 }
 0x3aa   :  { %v655_v17 = vsel %vm654_vm5, %v2378_v16, 0.0  ;;  %v668_v18 = vmul.f32 %v2378_v16, %v2378_v16  ;;  %v561_v19 = vpop.f32.mrb[5].mxu0 }
 0x3ab   :  { %v653_v22 = vsel %vm217_vm2, %v561_v19, 0.0  ;;  %v667_v23 = vmul.f32 %v561_v19, %v561_v19 }
 0x3ac   :  { %v672_v26 = vsel %vm654_vm5, %v668_v18, 0.0  ;;  %v656_v27 = vadd.f32 %v655_v17, %v653_v22  ;;  %v715_v17 = vsel %vm709_vm6, %v713_v9, %v714_v7 }
 0x3ad   :  { %v671_v28 = vsel %vm217_vm2, %v667_v23, 0.0  ;;  %v2397_v29 = vpop.f32.mrb[4].mxu1 }
 0x3ae   :  { %v673_v30 = vadd.f32 %v672_v26, %v671_v28  ;;  %v642_v31 = vpop.f32.mrb[5].mxu1  ;;  %v670_v32 = vmul.f32 %v2397_v29, %v2397_v29  ;;  %v659_v37 = vsel %vm654_vm5, %v2397_v29, 0.0 }
 0x3af   :  { %v657_v33 = vsel %vm217_vm2, %v642_v31, 0.0  ;;  %v669_v35 = vmul.f32 %v642_v31, %v642_v31 }
 0x3b0   :  { %v658_v36 = vadd.f32 %v657_v33, %v656_v27  ;;  %v676_v41 = vsel %vm654_vm5, %v670_v32, 0.0 }
 0x3b1   :  { %v674_v38 = vsel %vm217_vm2, %v669_v35, 0.0 }
 0x3b2   :  { %v660_v39 = vadd.f32 %v659_v37, %v658_v36  ;;  %v675_v40 = vadd.f32 %v674_v38, %v673_v30 }
 0x3b4   :  { %v661_v42 = vrot.slane %v660_v39, 4  ;;  %v677_v43 = vadd.f32 %v676_v41, %v675_v40  ;;  %v1012_v41 = vld [vmem:[%s3221_s2 + $0xd0] sm:$0xff] }
 0x3b6   :  { %v662_v44 = vadd.f32 %v661_v42, %v660_v39  ;;  %v678_v45 = vrot.slane %v677_v43, 4  ;;  %v1013_v42 = vld [vmem:[%s3221_s2 + $0xd8] sm:$0xff] }
 0x3b8   :  { %v663_v46 = vrot.slane %v662_v44, 2  ;;  %v679_v47 = vadd.f32 %v678_v45, %v677_v43  ;;  %v1014_v43 = vld [vmem:[%s3221_s2 + $0xe0] sm:$0xff]  ;;  %v1015_v45 = vld [vmem:[%s3221_s2 + $0xe8] sm:$0xff] }
 0x3ba   :  { %v664_v48 = vadd.f32 %v663_v46, %v662_v44  ;;  %v680_v49 = vrot.slane %v679_v47, 2  ;;  %v2668_v44 = vpack.c.bf16 %v1013_v42, %v1012_v41  ;;  %v2672_v46 = vpack.c.bf16 %v1015_v45, %v1014_v43 }
 0x3bb   :  { %v2765_v45 = vmov 0.0  }
 0x3bc   :  { %v665_v50 = vrot.slane %v664_v48, 1  ;;  %v681_v51 = vadd.f32 %v680_v49, %v679_v47  ;;  %v1016_v47 = vld [vmem:[%s3221_s2 + $0xf0] sm:$0xff]  ;;  %2669 = vmatprep.subr.bf16.mxu0 %v2668_v44  ;;  %2685 = vmatprep.subr.bf16.mxu1 %v2668_v44 }
 0x3be   :  { %v666_v54 = vadd.f32 %v665_v50, %v664_v48  ;;  %v682_v55 = vrot.slane %v681_v51, 1  ;;  %v1017_v48 = vld [vmem:[%s3221_s2 + $0xf8] sm:$0xff] }
 0x3bf   :  { %v2676_v49 = vpack.c.bf16 %v1017_v48, %v1016_v47 }
 0x3c0   :  { %v683_v58 = vadd.f32 %v682_v55, %v681_v51  ;;  %v684_v59 = vmul.f32 0.035714287, %v666_v54 }
 0x3c2   :  { %v685_v60 = vmul.f32 0.035714287, %v683_v58  ;;  %v686_v57 = vmul.f32 %v684_v59, %v684_v59 }
 0x3c4   :  { %v687_v52 = vsub.f32 %v685_v60, %v686_v57 }
 0x3c6   :  { %v688_v53 = vadd.f32 1e-05, %v687_v52 }
 0x3c8   :  { %2754 = vrsqrt.f32 %v688_v53 }
 0x3d2   :  { %v2755_v61 = vpop.eup %2754 }
 0x3d3   :  { %v690_v62 = vmul.f32 %v2755_v61, %v651_v56 }
 0x3d5   :  { %v691_v0 = vmul.f32 %v690_v62, %v684_v59  ;;  %v696_v1 = vrot.slane %v690_v62, %v2900_v34 }
 0x3d7   :  { %v692_v3 = vsub.f32 %v652_v63, %v691_v0  ;;  %v699_v4 = vmul.f32 %v696_v1, %v642_v31  ;;  %v698_v5 = vmul.f32 %v2378_v16, %v696_v1  ;;  %v697_v6 = vmul.f32 %v696_v1, %v561_v19 }
 0x3d8   :  { %v700_v10 = vmul.f32 %v2397_v29, %v696_v1 }
 0x3d9   :  { %v704_v11 = vrot.slane %v692_v3, %v2900_v34 }
 0x3db   :  { %v707_v12 = vadd.f32 %v704_v11, %v699_v4  ;;  %v706_v13 = vadd.f32 %v704_v11, %v698_v5  ;;  %v705_v14 = vadd.f32 %v704_v11, %v697_v6  ;;  %v708_v15 = vadd.f32 %v704_v11, %v700_v10 }
 0x3dd   :  { %v722_v16 = vadd.f32 %v715_v17, %v707_v12  ;;  %v721_v18 = vadd.f32 %v711_v2, %v706_v13  ;;  %v720_v19 = vadd.f32 %v712_v20, %v705_v14  ;;  %v723_v21 = vadd.f32 %v714_v7, %v708_v15 }
 0x3df   :  { %v2967_v22 = vmax.f32 %v722_v16, 0.0  ;;  %v2969_v24 = vmax.f32 %v721_v18, 0.0  ;;  %v2971_v25 = vmax.f32 %v720_v19, 0.0  ;;  %v2973_v23 = vmax.f32 %v723_v21, 0.0 }
 0x3e1   :  { %v733_v26 = vrot.slane %v2969_v24, 2  ;;  %v732_v27 = vrot.slane %v2971_v25, 2  ;;  %v736_v29 = vrot.slane %v2973_v23, 2  ;;  %v735_v30 = vrot.slane %v2967_v22, 2 }
 0x3e3   :  { %740 = vrot.lane.b32.xlu1 %v733_v26, %s2764_s16  ;;  %v734_v28 = vsel %vm709_vm6, %v732_v27, %v733_v26  ;;  %v737_v31 = vsel %vm709_vm6, %v735_v30, %v736_v29 }
 0x3e4   :  { %738 = vrot.lane.b32.xlu0 %v734_v28, %s2764_s16 }
 0x3e7   :  { %744 = vrot.lane.b32.xlu1 %v736_v29, %s2764_s16  ;;  %v924_v29 = vld [vmem:[%s3223_s3 + $0x5] sm:$0x1] }
 0x3e8   :  { %742 = vrot.lane.b32.xlu0 %v737_v31, %s2764_s16 }
 0x455   :  { %v741_v32 = vpop.permute.xlu1 %740 }
 0x456   :  { %v739_v33 = vpop.permute.xlu0 %738  ;;  %v751_v36 = vsel %vm217_vm2, %v2969_v24, %v741_v32  ;;  %v925_v32 = vld [vmem:[%s3223_s3 + $0x6] sm:$0x1] }
 0x457   :  { %v750_v35 = vsel %vm217_vm2, %v2971_v25, %v739_v33  ;;  %v1018_v33 = vld [vmem:[%s3221_s2 + $0x100] sm:$0xff] }
 0x458   :  { %2414 = vmatprep.mubr.msk.f32.mxu0 %vm230_vm3, %v750_v35  ;;  %v1019_v35 = vld [vmem:[%s3221_s2 + $0x108] sm:$0xff] }
 0x459   :  { %v745_v37 = vpop.permute.xlu1 %744  ;;  %2415 = vmatmul.mubr.msk.f32.vlgmr.msra.gmra.mrb[6].mxu0 %vm230_vm3, %v751_v36 }
 0x45a   :  { %v743_v38 = vpop.permute.xlu0 %742  ;;  %v753_v40 = vsel %vm217_vm2, %v2973_v23, %v745_v37  ;;  %2671 = vmatpush3.bf16.msra.mxu0 %v2668_v44 }
 0x45b   :  { %v752_v39 = vsel %vm217_vm2, %v2967_v22, %v743_v38  ;;  %2673 = vmatprep.subr.bf16.mxu0 %v2672_v46  ;;  %v2680_v38 = vpack.c.bf16 %v1019_v35, %v1018_v33 }
 0x45c   :  { %2433 = vmatprep.mubr.msk.f32.mxu1 %vm230_vm3, %v752_v39 }
 0x45d   :  { %2434 = vmatmul.mubr.msk.f32.vlgmr.msra.gmra.mrb[6].mxu1 %vm230_vm3, %v753_v40 }
 0x45e   :  { %2687 = vmatpush3.bf16.msra.mxu1 %v2668_v44  ;;  %2675 = vmatpush3.bf16.msra.mxu0 %v2672_v46 }
 0x45f   :  { %2689 = vmatprep.subr.bf16.mxu1 %v2672_v46  ;;  %2677 = vmatprep.subr.bf16.mxu0 %v2676_v49 }
 0x462   :  { %2691 = vmatpush3.bf16.msra.mxu1 %v2672_v46  ;;  %2679 = vmatpush3.bf16.msra.mxu0 %v2676_v49 }
 0x463   :  { %2693 = vmatprep.subr.bf16.mxu1 %v2676_v49  ;;  %2681 = vmatprep.subr.bf16.mxu0 %v2680_v38 }
 0x466   :  { %2695 = vmatpush3.bf16.msra.mxu1 %v2676_v49  ;;  %2683 = vmatpush3.bf16.msra.mxu0 %v2680_v38 }
 0x467   :  { %2697 = vmatprep.subr.bf16.mxu1 %v2680_v38  ;;  %2474 = vmatprep.subr.mxu0 %v2765_v45 }
 0x46a   :  { %2699 = vmatpush3.bf16.msra.mxu1 %v2680_v38 }
 0x46b   :  { %2479 = vmatprep.subr.mxu1 %v2765_v45 }
 0x52c   :  { %v2416_v50 = vpop.f32.mrb[6].mxu0 }
 0x52d   :  { %v928_v51 = vsel %vm927_vm7, %v2416_v50, 0.0  ;;  %v941_v54 = vmul.f32 %v2416_v50, %v2416_v50  ;;  %v834_v55 = vpop.f32.mrb[7].mxu0 }
 0x52e   :  { %v926_v58 = vsel %vm217_vm2, %v834_v55, 0.0  ;;  %v940_v59 = vmul.f32 %v834_v55, %v834_v55 }
 0x52f   :  { %v945_v60 = vsel %vm927_vm7, %v941_v54, 0.0  ;;  %v929_v57 = vadd.f32 %v928_v51, %v926_v58 }
 0x530   :  { %v944_v52 = vsel %vm217_vm2, %v940_v59, 0.0  ;;  %v2435_v53 = vpop.f32.mrb[6].mxu1 }
 0x531   :  { %v946_v56 = vadd.f32 %v945_v60, %v944_v52  ;;  %v915_v61 = vpop.f32.mrb[7].mxu1  ;;  %v943_v62 = vmul.f32 %v2435_v53, %v2435_v53  ;;  %v932_v2 = vsel %vm927_vm7, %v2435_v53, 0.0 }
 0x532   :  { %v930_v63 = vsel %vm217_vm2, %v915_v61, 0.0  ;;  %v942_v0 = vmul.f32 %v915_v61, %v915_v61 }
 0x533   :  { %v931_v1 = vadd.f32 %v930_v63, %v929_v57  ;;  %v949_v6 = vsel %vm927_vm7, %v943_v62, 0.0 }
 0x534   :  { %v947_v3 = vsel %vm217_vm2, %v942_v0, 0.0 }
 0x535   :  { %v933_v4 = vadd.f32 %v932_v2, %v931_v1  ;;  %v948_v5 = vadd.f32 %v947_v3, %v946_v56  ;;  %v1282_v2 = vld [vmem:[%s3221_s2 + $0x8] sm:$0xf]  ;;  %v1433_v3 = vld [vmem:[%s3221_s2 + $0x110] sm:$0xff] }
 0x537   :  { %v934_v7 = vrot.slane %v933_v4, 4  ;;  %v950_v8 = vadd.f32 %v949_v6, %v948_v5 }
 0x539   :  { %v935_v9 = vadd.f32 %v934_v7, %v933_v4  ;;  %v951_v10 = vrot.slane %v950_v8, 4  ;;  %v1434_v4 = vld [vmem:[%s3221_s2 + $0x118] sm:$0xff]  ;;  %v1280_v7 = vld [vmem:[%s3224_s1] sm:$0xff] }
 0x53b   :  { %v936_v11 = vrot.slane %v935_v9, 2  ;;  %v952_v12 = vadd.f32 %v951_v10, %v950_v8  ;;  %v1281_v8 = vld [vmem:[%s3224_s1 + $0x8] sm:$0xff]  ;;  %v2767_v10 = vmov 0.0|0.0  }
 0x53d   :  { %v937_v13 = vadd.f32 %v936_v11, %v935_v9  ;;  %v953_v14 = vrot.slane %v952_v12, 2  ;;  %v2701_v9 = vpack.c.bf16 %v1434_v4, %v1433_v3  ;;  %v1435_v11 = vld [vmem:[%s3221_s2 + $0x120] sm:$0xff] }
 0x53f   :  { %v938_v15 = vrot.slane %v937_v13, 1  ;;  %v954_v20 = vadd.f32 %v953_v14, %v952_v12  ;;  %v1436_v12 = vld [vmem:[%s3221_s2 + $0x128] sm:$0xff] }
 0x541   :  { %v939_v17 = vadd.f32 %v938_v15, %v937_v13  ;;  %v955_v16 = vrot.slane %v954_v20, 1  ;;  %v2704_v13 = vpack.c.bf16 %v1436_v12, %v1435_v11  ;;  %v1242_v11 = vrot.slane %v2969_v24, 4 }
 0x542   :  { %v1241_v12 = vrot.slane %v2971_v25, 4 }
 0x543   :  { %v956_v18 = vadd.f32 %v955_v16, %v954_v20  ;;  %v957_v19 = vmul.f32 0.041666668, %v939_v17 }
 0x545   :  { %v958_v21 = vmul.f32 0.041666668, %v956_v18  ;;  %v959_v26 = vmul.f32 %v957_v19, %v957_v19 }
 0x547   :  { %v960_v27 = vsub.f32 %v958_v21, %v959_v26 }
 0x549   :  { %v961_v28 = vadd.f32 1e-05, %v960_v27 }
 0x54b   :  { %2756 = vrsqrt.f32 %v961_v28 }
 0x555   :  { %v2757_v30 = vpop.eup %2756 }
 0x556   :  { %v963_v31 = vmul.f32 %v2757_v30, %v924_v29 }
 0x558   :  { %v964_v36 = vmul.f32 %v963_v31, %v957_v19  ;;  %v969_v37 = vrot.slane %v963_v31, %v2900_v34 }
 0x55a   :  { %v965_v39 = vsub.f32 %v925_v32, %v964_v36  ;;  %v972_v40 = vmul.f32 %v969_v37, %v915_v61  ;;  %v973_v41 = vmul.f32 %v2435_v53, %v969_v37  ;;  %v970_v42 = vmul.f32 %v969_v37, %v834_v55 }
 0x55b   :  { %v971_v43 = vmul.f32 %v2416_v50, %v969_v37 }
 0x55c   :  { %v977_v44 = vrot.slane %v965_v39, %v2900_v34 }
 0x55e   :  { %v980_v46 = vadd.f32 %v977_v44, %v972_v40  ;;  %v981_v47 = vadd.f32 %v977_v44, %v973_v41  ;;  %v978_v48 = vadd.f32 %v977_v44, %v970_v42  ;;  %v979_v49 = vadd.f32 %v977_v44, %v971_v43 }
 0x560   :  { %v984_v51 = vmax.f32 %v980_v46, 0.0  ;;  %v985_v54 = vmax.f32 %v981_v47, 0.0  ;;  %v982_v58 = vmax.f32 %v978_v48, 0.0  ;;  %v983_v55 = vmax.f32 %v979_v49, 0.0 }
 0x562   :  { %v993_v59 = vrot.slane %v984_v51, 2  ;;  %v994_v50 = vrot.slane %v985_v54, 2  ;;  %v990_v60 = vrot.slane %v982_v58, 2  ;;  %v991_v57 = vrot.slane %v983_v55, 2 }
 0x564   :  { %v995_v52 = vsel %vm709_vm6, %v993_v59, %v994_v50  ;;  %v992_v53 = vsel %vm709_vm6, %v990_v60, %v991_v57 }
 0x565   :  { %1000 = vrot.lane.b32.xlu1 %v995_v52, %s2764_s16  ;;  %996 = vrot.lane.b32.xlu0 %v992_v53, %s2764_s16 }
 0x569   :  { %1002 = vrot.lane.b32.xlu1 %v994_v50, %s2764_s16  ;;  %998 = vrot.lane.b32.xlu0 %v991_v57, %s2764_s16 }
 0x5d7   :  { %v1001_v56 = vpop.permute.xlu1 %1000  ;;  %v997_v61 = vpop.permute.xlu0 %996 }
 0x5d8   :  { %v1010_v62 = vsel %vm217_vm2, %v984_v51, %v1001_v56  ;;  %v1008_v63 = vsel %vm217_vm2, %v982_v58, %v997_v61 }
 0x5d9   :  { %2452 = vmatprep.mubr.msk.f32.mxu0 %vm230_vm3, %v1008_v63  ;;  %2471 = vmatprep.mubr.msk.f32.mxu1 %vm230_vm3, %v1010_v62  ;;  %v1182_v63 = vld [vmem:[%s3223_s3 + $0x7] sm:$0x1] }
 0x5db   :  { %v1003_v0 = vpop.permute.xlu1 %1002  ;;  %v999_v1 = vpop.permute.xlu0 %998 }
 0x5dc   :  { %v1011_v5 = vsel %vm217_vm2, %v985_v54, %v1003_v0  ;;  %v1009_v6 = vsel %vm217_vm2, %v983_v55, %v999_v1 }
 0x5dd   :  { %2453 = vmatmul.mubr.msk.f32.vlgmr.msra.gmra.mrb[8].mxu0 %vm230_vm3, %v1009_v6  ;;  %2472 = vmatmul.mubr.msk.f32.vlgmr.msra.gmra.mrb[8].mxu1 %vm230_vm3, %v1011_v5  ;;  %v1244_v5 = vrot.slane %v2967_v22, 4 }
 0x5de   :  { %2475 = vmatpush3.msk.msra.mxu0 %vm1240_vm8, %v1282_v2  ;;  %2480 = vmatpush3.msk.msra.mxu1 %vm1240_vm8, %v1282_v2  ;;  %v1183_v2 = vld [vmem:[%s3223_s3 + $0x8] sm:$0x1] }
 0x5df   :  { %2476 = vmatprep.mubr.msk.f32.mxu0 %vm2766_vm10, %v2765_v45  ;;  %2481 = vmatprep.mubr.msk.f32.mxu1 %vm2766_vm10, %v2765_v45 }
 0x5e0   :  { %2700 = vmatprep.subr.bf16.mxu0 %v2767_v10  ;;  %2706 = vmatprep.subr.bf16.mxu1 %v2767_v10 }
 0x5e1   :  { %2477 = vmatmul.mubr.msk.f32.vlgmr.msra.gmra.mrb[10].mxu0 %vm1283_vm9, %v1280_v7  ;;  %2482 = vmatmul.mubr.msk.f32.vlgmr.msra.gmra.mrb[10].mxu1 %vm1283_vm9, %v1281_v8 }
 0x5e2   :  { %2702 = vmatpush3.bf16.msra.mxu0 %v2701_v9  ;;  %2708 = vmatpush3.bf16.msra.mxu1 %v2701_v9 }
 0x5e3   :  { %2703 = vmatprep.subr.bf16.mxu0 %v2767_v10  ;;  %2709 = vmatprep.subr.bf16.mxu1 %v2767_v10 }
 0x5e4   :  { %2492 = vmatprep.mubr.msk.f32.mxu0 %vm2766_vm10, %v2765_v45  ;;  %2503 = vmatprep.mubr.msk.f32.mxu1 %vm2766_vm10, %v2765_v45 }
 0x5e6   :  { %2705 = vmatpush3.bf16.msra.mxu0 %v2704_v13  ;;  %2711 = vmatpush3.bf16.msra.mxu1 %v2704_v13 }
 0x5e7   :  { %2712 = vmatprep.subr.bf16.mxu0 %v2767_v10  ;;  %2718 = vmatprep.subr.bf16.mxu1 %v2767_v10 }
 0x6b0   :  { %v2454_v14 = vpop.f32.mrb[8].mxu0  ;;  %v2473_v15 = vpop.f32.mrb[8].mxu1 }
 0x6b1   :  { %v1186_v20 = vsel %vm1185_vm11, %v2454_v14, 0.0  ;;  %v1199_v17 = vmul.f32 %v2454_v14, %v2454_v14  ;;  %v1092_v16 = vpop.f32.mrb[9].mxu0  ;;  %v1173_v18 = vpop.f32.mrb[9].mxu1  ;;  %v1201_v29 = vmul.f32 %v2473_v15, %v2473_v15  ;;  %v1190_v39 = vsel %vm1185_vm11, %v2473_v15, 0.0 }
 0x6b2   :  { %v1184_v19 = vsel %vm217_vm2, %v1092_v16, 0.0  ;;  %v1198_v21 = vmul.f32 %v1092_v16, %v1092_v16  ;;  %v1200_v26 = vmul.f32 %v1173_v18, %v1173_v18  ;;  %v1188_v31 = vsel %vm217_vm2, %v1173_v18, 0.0 }
 0x6b3   :  { %v1203_v27 = vsel %vm1185_vm11, %v1199_v17, 0.0  ;;  %v1187_v28 = vadd.f32 %v1186_v20, %v1184_v19  ;;  %v1207_v43 = vsel %vm1185_vm11, %v1201_v29, 0.0  ;;  %v1245_v20 = vrot.slane %v2973_v23, 4 }
 0x6b4   :  { %v1202_v30 = vsel %vm217_vm2, %v1198_v21, 0.0  ;;  %v1356_v32 = vpop.f32.mrb[10].mxu0  ;;  %v1429_v33 = vpop.f32.mrb[10].mxu1  ;;  %v1205_v40 = vsel %vm217_vm2, %v1200_v26, 0.0 }
 0x6b5   :  { %v1204_v35 = vadd.f32 %v1203_v27, %v1202_v30  ;;  %v1189_v36 = vadd.f32 %v1188_v31, %v1187_v28  ;;  %v2478_v37 = vpop.f32.mrb[11].mxu0  ;;  %v2483_v38 = vpop.f32.mrb[11].mxu1  ;;  %2493 = vmatmul.mubr.msk.f32.vlgmr.msra.gmra.mrb[12].mxu0 %vm217_vm2, %v1356_v32  ;;  %2504 = vmatmul.mubr.msk.f32.vlgmr.msra.gmra.mrb[12].mxu1 %vm217_vm2, %v1429_v33  ;;  %v1243_v28 = vsel %vm1240_vm8, %v1241_v12, %v1242_v11 }
 0x6b6   :  { %2514 = vmatprep.mubr.msk.f32.mxu0 %vm2766_vm10, %v2765_v45  ;;  %2525 = vmatprep.mubr.msk.f32.mxu1 %vm2766_vm10, %v2765_v45  ;;  %v1246_v22 = vsel %vm1240_vm8, %v1244_v5, %v1245_v20  ;;  %v1628_v37 = vld [vmem:[%s3221_s2 + $0x130] sm:$0xff]  ;;  %v1629_v38 = vld [vmem:[%s3221_s2 + $0x138] sm:$0xff] }
 0x6b7   :  { %v1191_v41 = vadd.f32 %v1190_v39, %v1189_v36  ;;  %v1206_v42 = vadd.f32 %v1205_v40, %v1204_v35  ;;  %v2713_v39 = vpack.c.bf16 %v1629_v38, %v1628_v37  ;;  %v1630_v40 = vld [vmem:[%s3221_s2 + $0x140] sm:$0xff] }
 0x6b8   :  { %v1825_v38 = vld [vmem:[%s3221_s2 + $0x160] sm:$0xff] }
 0x6b9   :  { %v1192_v44 = vrot.slane %v1191_v41, 4  ;;  %v1208_v46 = vadd.f32 %v1207_v43, %v1206_v42  ;;  %2714 = vmatpush3.bf16.msra.mxu0 %v2713_v39  ;;  %2720 = vmatpush3.bf16.msra.mxu1 %v2713_v39  ;;  %v1826_v39 = vld [vmem:[%s3221_s2 + $0x168] sm:$0xff] }
 0x6ba   :  { %2715 = vmatprep.subr.bf16.mxu0 %v2767_v10  ;;  %2721 = vmatprep.subr.bf16.mxu1 %v2767_v10 }
 0x6bb   :  { %v1193_v47 = vadd.f32 %v1192_v44, %v1191_v41  ;;  %v1209_v48 = vrot.slane %v1208_v46, 4  ;;  %v1631_v41 = vld [vmem:[%s3221_s2 + $0x148] sm:$0xff] }
 0x6bc   :  { %v2716_v42 = vpack.c.bf16 %v1631_v41, %v1630_v40 }
 0x6bd   :  { %v1194_v49 = vrot.slane %v1193_v47, 2  ;;  %v1210_v51 = vadd.f32 %v1209_v48, %v1208_v46 }
 0x6be   :  { %2717 = vmatpush3.bf16.msra.mxu0 %v2716_v42  ;;  %2723 = vmatpush3.bf16.msra.mxu1 %v2716_v42  ;;  %v2728_v42 = vpack.c.bf16 %v1826_v39, %v1825_v38 }
 0x6bf   :  { %v1195_v54 = vadd.f32 %v1194_v49, %v1193_v47  ;;  %v1211_v58 = vrot.slane %v1210_v51, 2  ;;  %2724 = vmatprep.subr.bf16.mxu0 %v2767_v10  ;;  %2730 = vmatprep.subr.bf16.mxu1 %v2767_v10 }
 0x6c1   :  { %v1196_v55 = vrot.slane %v1195_v54, 1  ;;  %v1212_v59 = vadd.f32 %v1211_v58, %v1210_v51 }
 0x6c3   :  { %v1197_v50 = vadd.f32 %v1196_v55, %v1195_v54  ;;  %v1213_v60 = vrot.slane %v1212_v59, 1 }
 0x6c5   :  { %v1214_v57 = vadd.f32 %v1213_v60, %v1212_v59  ;;  %v1215_v52 = vmul.f32 0.05, %v1197_v50 }
 0x6c7   :  { %v1216_v53 = vmul.f32 0.05, %v1214_v57  ;;  %v1217_v56 = vmul.f32 %v1215_v52, %v1215_v52 }
 0x6c9   :  { %v1218_v61 = vsub.f32 %v1216_v53, %v1217_v56 }
 0x6cb   :  { %v1219_v62 = vadd.f32 1e-05, %v1218_v61 }
 0x6cd   :  { %2758 = vrsqrt.f32 %v1219_v62 }
 0x6d7   :  { %v2759_v0 = vpop.eup %2758 }
 0x6d8   :  { %v1221_v1 = vmul.f32 %v2759_v0, %v1182_v63 }
 0x6da   :  { %v1222_v3 = vmul.f32 %v1221_v1, %v1215_v52  ;;  %v1227_v4 = vrot.slane %v1221_v1, %v2900_v34 }
 0x6dc   :  { %v1223_v6 = vsub.f32 %v1183_v2, %v1222_v3  ;;  %v1228_v7 = vmul.f32 %v1227_v4, %v1092_v16  ;;  %v1229_v8 = vmul.f32 %v2454_v14, %v1227_v4  ;;  %v1230_v9 = vmul.f32 %v1227_v4, %v1173_v18 }
 0x6dd   :  { %v1231_v13 = vmul.f32 %v2473_v15, %v1227_v4 }
 0x6de   :  { %v1235_v17 = vrot.slane %v1223_v6, %v2900_v34 }
 0x6e0   :  { %v1236_v19 = vadd.f32 %v1235_v17, %v1228_v7  ;;  %v1237_v21 = vadd.f32 %v1235_v17, %v1229_v8  ;;  %v1238_v26 = vadd.f32 %v1235_v17, %v1230_v9  ;;  %v1239_v27 = vadd.f32 %v1235_v17, %v1231_v13 }
 0x6e2   :  { %v1253_v16 = vadd.f32 %v1246_v22, %v1238_v26  ;;  %v1254_v14 = vadd.f32 %v1245_v20, %v1239_v27  ;;  %v1251_v18 = vadd.f32 %v1243_v28, %v1236_v19  ;;  %v1252_v29 = vadd.f32 %v1242_v11, %v1237_v21  ;;  %v1583_v20 = vld [vmem:[%s3223_s3 + $0x9] sm:$0x1]  ;;  %v1584_v27 = vld [vmem:[%s3223_s3 + $0xa] sm:$0x1] }
 0x6e4   :  { %v1257_v24 = vmax.f32 %v1253_v16, 0.0  ;;  %v1258_v30 = vmax.f32 %v1254_v14, 0.0  ;;  %v1255_v25 = vmax.f32 %v1251_v18, 0.0  ;;  %v1256_v15 = vmax.f32 %v1252_v29, 0.0 }
 0x6e6   :  { %v1268_v23 = vsel %vm217_vm2, %v1257_v24, 0.0  ;;  %v1269_v31 = vsel %vm1185_vm11, %v1258_v30, 0.0  ;;  %v1259_v32 = vsel %vm217_vm2, %v1255_v25, 0.0  ;;  %v1260_v33 = vsel %vm1185_vm11, %v1256_v15, 0.0  ;;  %v1823_v25 = vld [vmem:[%s3221_s2 + $0x150] sm:$0xff]  ;;  %v1824_v15 = vld [vmem:[%s3221_s2 + $0x158] sm:$0xff] }
 0x6e7   :  { %v1270_v35 = vadd.f32 %v1269_v31, %v1268_v23  ;;  %v1261_v36 = vadd.f32 %v1260_v33, %v1259_v32 }
 0x6e9   :  { %v1271_v9 = vrot.slane %v1270_v35, 4  ;;  %v1262_v11 = vrot.slane %v1261_v36, 4 }
 0x6eb   :  { %v1272_v12 = vadd.f32 %v1271_v9, %v1270_v35  ;;  %v1263_v13 = vadd.f32 %v1262_v11, %v1261_v36  ;;  %v2725_v35 = vpack.c.bf16 %v1824_v15, %v1823_v25 }
 0x6ed   :  { %v1273_v17 = vrot.slane %v1272_v12, 2  ;;  %v1264_v19 = vrot.slane %v1263_v13, 2 }
 0x6ef   :  { %v1265_v16 = vadd.f32 %v1264_v19, %v1263_v13  ;;  %v1274_v14 = vadd.f32 %v1273_v17, %v1272_v12 }
 0x6f1   :  { %v1266_v23 = vrot.slane %v1265_v16, 1  ;;  %v1275_v31 = vrot.slane %v1274_v14, 1 }
 0x6f3   :  { %v1267_v40 = vadd.f32 %v1266_v23, %v1265_v16  ;;  %v1276_v41 = vadd.f32 %v1275_v31, %v1274_v14  ;;  %v1778_v16 = vld [vmem:[%s3223_s3 + $0xb] sm:$0x1] }
 0x788   :  { %v1506_v43 = vpop.f32.mrb[12].mxu0  ;;  %v1579_v44 = vpop.f32.mrb[12].mxu1 }
 0x789   :  { %v1585_v46 = vsel %vm217_vm2, %v1506_v43, 0.0  ;;  %v1594_v47 = vmul.f32 %v1506_v43, %v1506_v43  ;;  %v1586_v48 = vsel %vm217_vm2, %v1579_v44, 0.0  ;;  %v1595_v49 = vmul.f32 %v1579_v44, %v1579_v44  ;;  %v2494_v51 = vpop.f32.mrb[13].mxu0  ;;  %v2505_v54 = vpop.f32.mrb[13].mxu1 }
 0x78a   :  { %v1587_v58 = vadd.f32 %v1586_v48, %v1585_v46  ;;  %v1975_v48 = vld [vmem:[%s3221_s2 + $0x170] sm:$0xff]  ;;  %v1977_v54 = vld [vmem:[%s3221_s2 + $0x180] sm:$0xff] }
 0x78b   :  { %v1596_v55 = vsel %vm217_vm2, %v1594_v47, 0.0  ;;  %v1597_v59 = vsel %vm217_vm2, %v1595_v49, 0.0  ;;  %v1976_v49 = vld [vmem:[%s3221_s2 + $0x178] sm:$0xff] }
 0x78c   :  { %v1588_v50 = vrot.slane %v1587_v58, 4  ;;  %v1598_v60 = vadd.f32 %v1597_v59, %v1596_v55  ;;  %v2737_v51 = vpack.c.bf16 %v1976_v49, %v1975_v48 }
 0x78e   :  { %v1589_v57 = vadd.f32 %v1588_v50, %v1587_v58  ;;  %v1599_v52 = vrot.slane %v1598_v60, 4 }
 0x790   :  { %v1590_v53 = vrot.slane %v1589_v57, 2  ;;  %v1600_v56 = vadd.f32 %v1599_v52, %v1598_v60 }
 0x792   :  { %v1591_v61 = vadd.f32 %v1590_v53, %v1589_v57  ;;  %v1601_v62 = vrot.slane %v1600_v56, 2 }
 0x794   :  { %v1592_v63 = vrot.slane %v1591_v61, 1  ;;  %v1602_v0 = vadd.f32 %v1601_v62, %v1600_v56 }
 0x796   :  { %v1593_v1 = vadd.f32 %v1592_v63, %v1591_v61  ;;  %v1603_v2 = vrot.slane %v1602_v0, 1 }
 0x798   :  { %v1604_v3 = vadd.f32 %v1603_v2, %v1602_v0  ;;  %v1605_v4 = vmul.f32 0.0625, %v1593_v1 }
 0x79a   :  { %v1606_v5 = vmul.f32 0.0625, %v1604_v3  ;;  %v1607_v6 = vmul.f32 %v1605_v4, %v1605_v4 }
 0x79c   :  { %v1608_v7 = vsub.f32 %v1606_v5, %v1607_v6 }
 0x79e   :  { %v1609_v8 = vadd.f32 1e-05, %v1608_v7 }
 0x7a0   :  { %2760 = vrsqrt.f32 %v1609_v8 }
 0x7aa   :  { %v2761_v21 = vpop.eup %2760 }
 0x7ab   :  { %v1611_v26 = vmul.f32 %v2761_v21, %v1583_v20 }
 0x7ad   :  { %v1612_v28 = vmul.f32 %v1611_v26, %v1605_v4  ;;  %v1617_v22 = vrot.slane %v1611_v26, %v2900_v34 }
 0x7af   :  { %v1613_v18 = vsub.f32 %v1584_v27, %v1612_v28  ;;  %v1618_v29 = vmul.f32 %v1617_v22, %v1506_v43  ;;  %v1619_v24 = vmul.f32 %v1617_v22, %v1579_v44  ;;  %v1278_v43 = vmul.f32 0.1, %v1267_v40  ;;  %v2181_v40 = vld [vmem:[%s3223_s3 + $0xd] ss:$0 sm:$0xff] }
 0x7b0   :  { %v1279_v44 = vmul.f32 0.1, %v1276_v41 }
 0x7b1   :  { %v1623_v30 = vrot.slane %v1613_v18, %v2900_v34  ;;  %v1821_v46 = vmax.f32 %v1278_v43, 0.0 }
 0x7b2   :  { %v1822_v47 = vmax.f32 %v1279_v44, 0.0 }
 0x7b3   :  { %v1624_v32 = vadd.f32 %v1623_v30, %v1618_v29  ;;  %v1625_v33 = vadd.f32 %v1623_v30, %v1619_v24  ;;  %v1779_v29 = vld [vmem:[%s3223_s3 + $0xc] sm:$0x1] }
 0x7b5   :  { %v1626_v36 = vmax.f32 %v1624_v32, 0.0  ;;  %v1627_v37 = vmax.f32 %v1625_v33, 0.0 }
 0x7b7   :  { %2515 = vmatmul.mubr.msk.f32.vlgmr.msra.gmra.mrb[14].mxu0 %vm217_vm2, %v1626_v36  ;;  %2526 = vmatmul.mubr.msk.f32.vlgmr.msra.gmra.mrb[14].mxu1 %vm217_vm2, %v1627_v37 }
 0x7b8   :  { %2726 = vmatpush3.bf16.msra.mxu0 %v2725_v35  ;;  %2732 = vmatpush3.bf16.msra.mxu1 %v2725_v35 }
 0x7b9   :  { %2727 = vmatprep.subr.bf16.mxu0 %v2767_v10  ;;  %2733 = vmatprep.subr.bf16.mxu1 %v2767_v10 }
 0x7ba   :  { %2536 = vmatprep.mubr.msk.f32.mxu0 %vm2766_vm10, %v2765_v45  ;;  %2547 = vmatprep.mubr.msk.f32.mxu1 %vm2766_vm10, %v2765_v45 }
 0x7bc   :  { %2729 = vmatpush3.bf16.msra.mxu0 %v2728_v42  ;;  %2735 = vmatpush3.bf16.msra.mxu1 %v2728_v42 }
 0x7bd   :  { %2736 = vmatprep.subr.bf16.mxu0 %v2767_v10  ;;  %2742 = vmatprep.subr.bf16.mxu1 %v2767_v10 }
 0x7bf   :  { %2537 = vmatmul.mubr.msk.f32.vlgmr.msra.gmra.mrb[16].mxu0 %vm217_vm2, %v1821_v46  ;;  %2548 = vmatmul.mubr.msk.f32.vlgmr.msra.gmra.mrb[16].mxu1 %vm217_vm2, %v1822_v47 }
 0x7c0   :  { %2558 = vmatprep.mubr.msk.f32.mxu0 %vm2766_vm10, %v2765_v45  ;;  %2569 = vmatprep.mubr.msk.f32.mxu1 %vm2766_vm10, %v2765_v45  ;;  %v1978_v45 = vld [vmem:[%s3221_s2 + $0x188] sm:$0xff] }
 0x7c1   :  { %2738 = vmatpush3.bf16.msra.mxu0 %v2737_v51  ;;  %2744 = vmatpush3.bf16.msra.mxu1 %v2737_v51  ;;  %v2740_v58 = vpack.c.bf16 %v1978_v45, %v1977_v54 }
 0x7c2   :  { %2739 = vmatprep.subr.bf16.mxu0 %v2767_v10  ;;  %2745 = vmatprep.subr.bf16.mxu1 %v2767_v10 }
 0x7c5   :  { %2741 = vmatpush3.bf16.msra.mxu0 %v2740_v58  ;;  %2747 = vmatpush3.bf16.msra.mxu1 %v2740_v58 }
 0x88a   :  { %v1701_v55 = vpop.f32.mrb[14].mxu0  ;;  %v1774_v59 = vpop.f32.mrb[14].mxu1 }
 0x88b   :  { %v1780_v50 = vsel %vm217_vm2, %v1701_v55, 0.0  ;;  %v1789_v60 = vmul.f32 %v1701_v55, %v1701_v55  ;;  %v1781_v57 = vsel %vm217_vm2, %v1774_v59, 0.0  ;;  %v1790_v52 = vmul.f32 %v1774_v59, %v1774_v59  ;;  %v2516_v10 = vpop.f32.mrb[15].mxu0  ;;  %v2527_v53 = vpop.f32.mrb[15].mxu1 }
 0x88c   :  { %v1782_v56 = vadd.f32 %v1781_v57, %v1780_v50 }
 0x88d   :  { %v1791_v61 = vsel %vm217_vm2, %v1789_v60, 0.0  ;;  %v1792_v62 = vsel %vm217_vm2, %v1790_v52, 0.0 }
 0x88e   :  { %v1783_v63 = vrot.slane %v1782_v56, 4  ;;  %v1793_v0 = vadd.f32 %v1792_v62, %v1791_v61 }
 0x890   :  { %v1784_v1 = vadd.f32 %v1783_v63, %v1782_v56  ;;  %v1794_v2 = vrot.slane %v1793_v0, 4 }
 0x892   :  { %v1785_v3 = vrot.slane %v1784_v1, 2  ;;  %v1795_v4 = vadd.f32 %v1794_v2, %v1793_v0  ;;  %v1896_v5 = vpop.f32.mrb[16].mxu0  ;;  %v1969_v6 = vpop.f32.mrb[16].mxu1 }
 0x893   :  { %v2538_v7 = vpop.f32.mrb[17].mxu0  ;;  %v2549_v8 = vpop.f32.mrb[17].mxu1  ;;  %v2128_v37 = vrot.slane %v1896_v5, %v2900_v34  ;;  %v2132_v38 = vrot.slane %v1969_v6, %v2900_v34 }
 0x894   :  { %v1786_v9 = vadd.f32 %v1785_v3, %v1784_v1  ;;  %v1796_v11 = vrot.slane %v1795_v4, 2 }
 0x896   :  { %v1787_v12 = vrot.slane %v1786_v9, 1  ;;  %v1797_v13 = vadd.f32 %v1796_v11, %v1795_v4 }
 0x898   :  { %v1788_v20 = vadd.f32 %v1787_v12, %v1786_v9  ;;  %v1798_v17 = vrot.slane %v1797_v13, 1 }
 0x89a   :  { %v1799_v19 = vadd.f32 %v1798_v17, %v1797_v13  ;;  %v1800_v21 = vmul.f32 0.0625, %v1788_v20 }
 0x89c   :  { %v1801_v26 = vmul.f32 0.0625, %v1799_v19  ;;  %v1802_v27 = vmul.f32 %v1800_v21, %v1800_v21 }
 0x89e   :  { %v1803_v28 = vsub.f32 %v1801_v26, %v1802_v27 }
 0x8a0   :  { %v1804_v22 = vadd.f32 1e-05, %v1803_v28 }
 0x8a2   :  { %2762 = vrsqrt.f32 %v1804_v22 }
 0x8ac   :  { %v2763_v14 = vpop.eup %2762 }
 0x8ad   :  { %v1806_v18 = vmul.f32 %v2763_v14, %v1778_v16 }
 0x8af   :  { %v1807_v24 = vmul.f32 %v1806_v18, %v1800_v21  ;;  %v1812_v30 = vrot.slane %v1806_v18, %v2900_v34 }
 0x8b1   :  { %v1808_v25 = vsub.f32 %v1779_v29, %v1807_v24  ;;  %v1813_v15 = vmul.f32 %v1812_v30, %v1701_v55  ;;  %v1814_v23 = vmul.f32 %v1812_v30, %v1774_v59 }
 0x8b3   :  { %v1818_v31 = vrot.slane %v1808_v25, %v2900_v34 }
 0x8b5   :  { %v1819_v32 = vadd.f32 %v1818_v31, %v1813_v15  ;;  %v1820_v33 = vadd.f32 %v1818_v31, %v1814_v23 }
 0x8b7   :  { %v1973_v35 = vmax.f32 %v1819_v32, 0.0  ;;  %v1974_v36 = vmax.f32 %v1820_v33, 0.0 }
 0x8b9   :  { %2559 = vmatmul.mubr.msk.f32.vlgmr.msra.gmra.mrb[18].mxu0 %vm217_vm2, %v1973_v35  ;;  %2570 = vmatmul.mubr.msk.f32.vlgmr.msra.gmra.mrb[18].mxu1 %vm217_vm2, %v1974_v36 }
 0x98c   :  { %v2048_v39 = vpop.f32.mrb[18].mxu0  ;;  %v2121_v41 = vpop.f32.mrb[18].mxu1 }
 0x98d   :  { %v2133_v42 = vadd.f32 %v2128_v37, %v2048_v39  ;;  %v2134_v43 = vadd.f32 %v2132_v38, %v2121_v41  ;;  %v2560_v44 = vpop.f32.mrb[19].mxu0  ;;  %v2571_v46 = vpop.f32.mrb[19].mxu1 }
 0x98f   :  { %v2140_v47 = vadd.f32 %v2181_v40, %v2133_v42  ;;  %v2141_v48 = vadd.f32 %v2181_v40, %v2134_v43 }
 0x991   :  { %2142 = vst.msk [vmem:[%s3225_s4] sm:$0xff] %vm1283_vm9, %v2140_v47  ;;  %2143 = vst.msk [vmem:[%s3225_s4 + $0x8] sm:$0xff] %vm1283_vm9, %v2141_v48 }

</bundles_post_ra>
